<compile_context>
chip_gen: v5e
topology: v5e:2x2
jax: 0.10.0
libtpu: 0.0.40
codegen_flags: <defaults>
</compile_context>

<pallas_src>
import functools

import jax
import jax.numpy as jnp
from jax.experimental import pallas as pl
from jax.experimental.pallas import tpu as pltpu

HIDDEN = 768   # fixed by nn.Linear(768, n_classes) in the module
LANE = 128     # TPU lane width: pad class dim up to this for dense stores
SUBLANE = 8    # TPU sublane width: batch tile must be a multiple of this


def _round_up(x, m):
    return ((x + m - 1) // m) * m


def bert_cls_kernel(cls_ref, wp_ref, bp_ref, wfc_ref, bfc_ref, out_ref):
    # cls_ref:  (TB, H)  bf16  CLS-token activations for this batch tile
    # wp_ref:   (H, H)   bf16  pooler dense weight (in, out)
    # bp_ref:   (1, H)   f32   pooler dense bias
    # wfc_ref:  (H, Cp)  bf16  fc weight (in, out), lane-padded with zeros
    # bfc_ref:  (1, Cp)  f32   fc bias, lane-padded with zeros
    # out_ref:  (TB, Cp) f32   lane-padded logits
    #
    # BERT pooler: tanh(cls @ Wp + bp) — bf16 MXU matmul, f32 accumulate/epilogue.
    pooled = jnp.tanh(
        jnp.dot(cls_ref[...], wp_ref[...], preferred_element_type=jnp.float32)
        + bp_ref[...]
    )
    # Classification head: pooled @ Wfc + bfc
    logits = (
        jnp.dot(pooled.astype(jnp.bfloat16), wfc_ref[...],
                preferred_element_type=jnp.float32)
        + bfc_ref[...]
    )
    out_ref[...] = logits.astype(out_ref.dtype)


@functools.partial(jax.jit)
def bert_cls_forward(last_hidden_state, wp, bp, wfc, bfc):
    B, S, H = last_hidden_state.shape
    assert H == HIDDEN
    C = wfc.shape[1]

    # Slice the CLS token here: only (B, H) — not (B, S, H) — reaches the kernel.
    cls = last_hidden_state[:, 0, :]                                   # (B, H)

    # Adaptive batch tile: multiple of 8 sublanes, capped at a 128-row MXU tile.
    TB = min(128, _round_up(B, SUBLANE))
    Bp = _round_up(B, TB)
    Cp = _round_up(C, LANE)

    cls_p = jnp.pad(cls, ((0, Bp - B), (0, 0))).astype(jnp.bfloat16)    # (Bp, H)
    wp_b = wp.astype(jnp.bfloat16)                                      # (H, H)
    bp_2 = bp.reshape(1, H).astype(jnp.float32)                         # (1, H)
    wfc_p = jnp.pad(wfc, ((0, 0), (0, Cp - C))).astype(jnp.bfloat16)    # (H, Cp)
    bfc_p = jnp.pad(bfc.reshape(1, C),
                    ((0, 0), (0, Cp - C))).astype(jnp.float32)          # (1, Cp)

    cost = pl.CostEstimate(
        flops=2 * Bp * H * (H + Cp),
        transcendentals=Bp * H,
        bytes_accessed=(Bp * H * 2        # CLS activations (bf16)
                        + H * H * 2       # pooler W (bf16, VMEM-resident)
                        + H * Cp * 2      # fc W (bf16, VMEM-resident)
                        + H * 4 + Cp * 4  # biases (f32)
                        + Bp * Cp * 4),   # logits out (f32)
    )

    out = pl.pallas_call(
        bert_cls_kernel,
        out_shape=jax.ShapeDtypeStruct((Bp, Cp), jnp.float32),
        grid_spec=pltpu.PrefetchScalarGridSpec(
            num_scalar_prefetch=0,
            grid=(Bp // TB,),
            in_specs=[
                pl.BlockSpec((TB, H), lambda i: (i, 0)),   # per-tile CLS rows
                pl.BlockSpec((H, H), lambda i: (0, 0)),    # pooler W (resident)
                pl.BlockSpec((1, H), lambda i: (0, 0)),    # pooler b (resident)
                pl.BlockSpec((H, Cp), lambda i: (0, 0)),   # fc W     (resident)
                pl.BlockSpec((1, Cp), lambda i: (0, 0)),   # fc b     (resident)
            ],
            out_specs=pl.BlockSpec((TB, Cp), lambda i: (i, 0)),
        ),
        compiler_params=pltpu.CompilerParams(
            dimension_semantics=("parallel",),             # 2 TCs on v7x
        ),
        cost_estimate=cost,
    )(cls_p, wp_b, bp_2, wfc_p, bfc_p)

    return out[:B, :C]


def reference_forward(last_hidden_state, wp, bp, wfc, bfc):
    cls = last_hidden_state[:, 0, :]
    pooled = jnp.tanh(cls @ wp + bp)
    return pooled @ wfc + bfc


if __name__ == "__main__":
    B, S, H, C = 2, 8, HIDDEN, 4  # small shapes consistent with the module

    key = jax.random.PRNGKey(0)
    k_h, k_wp, k_bp, k_wfc, k_bfc = jax.random.split(key, 5)

    # Synthetic encoder output (stands in for model(**batch).last_hidden_state)
    last_hidden_state = jax.random.normal(k_h, (B, S, H), dtype=jnp.float32)

    # Deterministic parameter init (BERT-style N(0, 0.02) weights, small biases)
    wp = 0.02 * jax.random.normal(k_wp, (H, H), dtype=jnp.float32)
    bp = jnp.zeros((H,), dtype=jnp.float32)
    wfc = 0.02 * jax.random.normal(k_wfc, (H, C), dtype=jnp.float32)
    bfc = 0.01 * jnp.ones((C,), dtype=jnp.float32)

    logits = bert_cls_forward(last_hidden_state, wp, bp, wfc, bfc)
    logits = jax.block_until_ready(logits)

    ref = reference_forward(last_hidden_state, wp, bp, wfc, bfc)
    assert logits.shape == (B, C)
    # bf16 MXU operands with f32 accumulation -> loosened tolerance vs f32 ref.
    assert jnp.allclose(logits, ref, atol=5e-2, rtol=5e-2), float(
        jnp.max(jnp.abs(logits - ref)))

    print("KERNEL_OK")
</pallas_src>

<mosaic_0001>
module attributes {stable_mosaic.version = 11 : i64} {
  func.func @bert_cls_kernel(%arg0: i32, %arg1: memref<8x768xbf16, #tpu.memory_space<vmem>>, %arg2: memref<768x768xbf16, #tpu.memory_space<vmem>>, %arg3: memref<1x768xf32, #tpu.memory_space<vmem>>, %arg4: memref<768x128xbf16, #tpu.memory_space<vmem>>, %arg5: memref<1x128xf32, #tpu.memory_space<vmem>>, %arg6: memref<8x128xf32, #tpu.memory_space<vmem>>) attributes {dimension_semantics = [#tpu.dimension_semantics<parallel>], iteration_bounds = array<i64: 1>, scalar_prefetch = 0 : i64, scratch_operands = 0 : i64, tpu.core_type = #tpu.core_type<tc>, window_params = [{transform_indices = @transform_0, window_bounds = array<i64: 8, 768>}, {pipeline_mode = #tpu.pipeline_mode<synchronous>, transform_indices = @transform_1, window_bounds = array<i64: 768, 768>}, {pipeline_mode = #tpu.pipeline_mode<synchronous>, transform_indices = @transform_2, window_bounds = array<i64: 1, 768>}, {pipeline_mode = #tpu.pipeline_mode<synchronous>, transform_indices = @transform_3, window_bounds = array<i64: 768, 128>}, {pipeline_mode = #tpu.pipeline_mode<synchronous>, transform_indices = @transform_4, window_bounds = array<i64: 1, 128>}, {transform_indices = @transform_5, window_bounds = array<i64: 8, 128>}]} {
    %c0 = arith.constant 0 : index
    %c0_0 = arith.constant 0 : index
    %0 = vector.load %arg1[%c0, %c0_0] : memref<8x768xbf16, #tpu.memory_space<vmem>>, vector<8x768xbf16>
    %c0_1 = arith.constant 0 : index
    %c0_2 = arith.constant 0 : index
    %1 = vector.load %arg2[%c0_1, %c0_2] : memref<768x768xbf16, #tpu.memory_space<vmem>>, vector<768x768xbf16>
    %cst = arith.constant dense<0.000000e+00> : vector<8x768xf32>
    %2 = tpu.matmul %0, %1, %cst {dimension_numbers = #tpu.dot_dimension_numbers<[1], [0], [0], [1], [0, 0, 1, 1], [], []>} : vector<8x768xbf16>, vector<768x768xbf16>, vector<8x768xf32> -> vector<8x768xf32>
    %c0_3 = arith.constant 0 : index
    %c0_4 = arith.constant 0 : index
    %3 = vector.load %arg3[%c0_3, %c0_4] : memref<1x768xf32, #tpu.memory_space<vmem>>, vector<1x768xf32>
    %4 = vector.broadcast %3 : vector<1x768xf32> to vector<8x768xf32>
    %5 = arith.addf %2, %4 : vector<8x768xf32>
    %6 = math.tanh %5 : vector<8x768xf32>
    %7 = arith.truncf %6 : vector<8x768xf32> to vector<8x768xbf16>
    %c0_5 = arith.constant 0 : index
    %c0_6 = arith.constant 0 : index
    %8 = vector.load %arg4[%c0_5, %c0_6] : memref<768x128xbf16, #tpu.memory_space<vmem>>, vector<768x128xbf16>
    %cst_7 = arith.constant dense<0.000000e+00> : vector<8x128xf32>
    %9 = tpu.matmul %7, %8, %cst_7 {dimension_numbers = #tpu.dot_dimension_numbers<[1], [0], [0], [1], [0, 0, 1, 1], [], []>} : vector<8x768xbf16>, vector<768x128xbf16>, vector<8x128xf32> -> vector<8x128xf32>
    %c0_8 = arith.constant 0 : index
    %c0_9 = arith.constant 0 : index
    %10 = vector.load %arg5[%c0_8, %c0_9] : memref<1x128xf32, #tpu.memory_space<vmem>>, vector<1x128xf32>
    %11 = vector.broadcast %10 : vector<1x128xf32> to vector<8x128xf32>
    %12 = arith.addf %9, %11 : vector<8x128xf32>
    %c0_10 = arith.constant 0 : index
    %c0_11 = arith.constant 0 : index
    %13 = vector.load %arg6[%c0_10, %c0_11] : memref<8x128xf32, #tpu.memory_space<vmem>>, vector<8x128xf32>
    tpu.vector_store %arg6[%c0_10, %c0_11], %12 {strides = array<i32>} : memref<8x128xf32, #tpu.memory_space<vmem>>, vector<8x128xf32>,
    return
  }
  func.func @transform_0(%arg0: i32) -> (i32, i32) {
    %c0_i32 = arith.constant 0 : i32
    %c0_i32_0 = arith.constant 0 : i32
    return %arg0, %c0_i32 : i32, i32
  }
  func.func @transform_1(%arg0: i32) -> (i32, i32) {
    %c0_i32 = arith.constant 0 : i32
    %c0_i32_0 = arith.constant 0 : i32
    %c0_i32_1 = arith.constant 0 : i32
    return %c0_i32, %c0_i32_0 : i32, i32
  }
  func.func @transform_2(%arg0: i32) -> (i32, i32) {
    %c0_i32 = arith.constant 0 : i32
    %c0_i32_0 = arith.constant 0 : i32
    %c0_i32_1 = arith.constant 0 : i32
    return %c0_i32, %c0_i32_0 : i32, i32
  }
  func.func @transform_3(%arg0: i32) -> (i32, i32) {
    %c0_i32 = arith.constant 0 : i32
    %c0_i32_0 = arith.constant 0 : i32
    %c0_i32_1 = arith.constant 0 : i32
    return %c0_i32, %c0_i32_0 : i32, i32
  }
  func.func @transform_4(%arg0: i32) -> (i32, i32) {
    %c0_i32 = arith.constant 0 : i32
    %c0_i32_0 = arith.constant 0 : i32
    %c0_i32_1 = arith.constant 0 : i32
    return %c0_i32, %c0_i32_0 : i32, i32
  }
  func.func @transform_5(%arg0: i32) -> (i32, i32) {
    %c0_i32 = arith.constant 0 : i32
    %c0_i32_0 = arith.constant 0 : i32
    return %arg0, %c0_i32 : i32, i32
  }
}

</mosaic_0001>

<bundles_post_ra>
// kernel: bert_cls_forward.1
= control target key start
LH: loop header
LB: loop body
LE: loop exit
PB: predicated region body
PF: predicated region fallthrough
CT: control target
= control target key end

     0   :  { %s6436_s1 = inlined_call_operand.vmem [shape: bf16[768,768], index: 1, kind: input, shape index: {}]   ;;  %s6437_s0 = inlined_call_operand.vmem [shape: bf16[8,768], index: 0, kind: input, shape index: {}]   ;;  %s6438_s2 = inlined_call_operand.vmem [shape: f32[1,768], index: 2, kind: input, shape index: {}]   ;;  %s6439_s3 = inlined_call_operand.vmem [shape: bf16[768,128], index: 3, kind: input, shape index: {}]   ;;  %s6440_s4 = inlined_call_operand.vmem [shape: f32[1,128], index: 4, kind: input, shape index: {}]   ;;  %s6441_s5 = inlined_call_operand.vmem [shape: f32[8,128], index: 5, kind: output, shape index: {}]  }
   0x1   :  { %v2907_v0 = vld [vmem:[%s6436_s1 + $0x150] sm:$0xf]  ;;  %v4126_v1 = vld [vmem:[%s6436_s1 + $0x164] sm:$0xf0]  ;;  %v2883_v11 = vld [vmem:[%s6436_s1 + $0x120] sm:$0xf] }
   0x2   :  { %v3099_v2 = vld [vmem:[%s6436_s1 + $0x2d0] sm:$0xf]  ;;  %v2908_v3 = vor.u32 %v4126_v1, %v2907_v0  ;;  %v4174_v4 = vld [vmem:[%s6436_s1 + $0x2e4] sm:$0xf0]  ;;  %v4120_v13 = vld [vmem:[%s6436_s1 + $0x134] sm:$0xf0] }
   0x3   :  { %v3291_v5 = vld [vmem:[%s6436_s1 + $0x450] sm:$0xf]  ;;  %v4222_v6 = vld [vmem:[%s6436_s1 + $0x464] sm:$0xf0]  ;;  %v3100_v7 = vor.u32 %v4174_v4, %v3099_v2  ;;  %v3075_v14 = vld [vmem:[%s6436_s1 + $0x2a0] sm:$0xf]  ;;  %v2884_v16 = vor.u32 %v4120_v13, %v2883_v11 }
   0x4   :  { %v3292_v8 = vor.u32 %v4222_v6, %v3291_v5  ;;  %v3483_v9 = vld [vmem:[%s6436_s1 + $0x5d0] sm:$0xf]  ;;  %v4270_v10 = vld [vmem:[%s6436_s1 + $0x5e4] sm:$0xf0]  ;;  %1786 = vmatpush.bf16.msra.mxu0 %v2908_v3  ;;  %v4168_v15 = vld [vmem:[%s6436_s1 + $0x2b4] sm:$0xf0] }
   0x5   :  { %v3484_v12 = vor.u32 %v4270_v10, %v3483_v9  ;;  %1799 = vmatpush.bf16.msra.mxu1 %v3100_v7  ;;  %v3076_v17 = vor.u32 %v4168_v15, %v3075_v14  ;;  %v3267_v18 = vld [vmem:[%s6436_s1 + $0x420] sm:$0xf]  ;;  %v4216_v19 = vld [vmem:[%s6436_s1 + $0x434] sm:$0xf0]  ;;  %v2859_v23 = vld [vmem:[%s6436_s1 + $0xf0] sm:$0xf] }
   0x6   :  { %1812 = vmatpush.bf16.msra.mxu2 %v3292_v8  ;;  %v3459_v20 = vld [vmem:[%s6436_s1 + $0x5a0] sm:$0xf]  ;;  %v3268_v21 = vor.u32 %v4216_v19, %v3267_v18  ;;  %v4264_v22 = vld [vmem:[%s6436_s1 + $0x5b4] sm:$0xf0]  ;;  %v4114_v24 = vld [vmem:[%s6436_s1 + $0x104] sm:$0xf0] }
   0x7   :  { %1825 = vmatpush.bf16.msra.mxu3 %v3484_v12  ;;  %v3460_v25 = vor.u32 %v4264_v22, %v3459_v20  ;;  %v3051_v26 = vld [vmem:[%s6436_s1 + $0x270] sm:$0xf]  ;;  %v4162_v27 = vld [vmem:[%s6436_s1 + $0x284] sm:$0xf0]  ;;  %v2860_v29 = vor.u32 %v4114_v24, %v2859_v23  ;;  %v2835_v35 = vld [vmem:[%s6436_s1 + $0xc0] sm:$0xf] }
   0x8   :  { %v3243_v28 = vld [vmem:[%s6436_s1 + $0x3f0] sm:$0xf]  ;;  %1787 = vmatpush.bf16.msra.mxu0 %v2884_v16  ;;  %v4210_v30 = vld [vmem:[%s6436_s1 + $0x404] sm:$0xf0]  ;;  %v3052_v33 = vor.u32 %v4162_v27, %v3051_v26  ;;  %v4108_v36 = vld [vmem:[%s6436_s1 + $0xd4] sm:$0xf0] }
   0x9   :  { %v3435_v31 = vld [vmem:[%s6436_s1 + $0x570] sm:$0xf]  ;;  %v4258_v32 = vld [vmem:[%s6436_s1 + $0x584] sm:$0xf0]  ;;  %1800 = vmatpush.bf16.msra.mxu1 %v3076_v17  ;;  %v3244_v34 = vor.u32 %v4210_v30, %v3243_v28  ;;  %v3027_v37 = vld [vmem:[%s6436_s1 + $0x240] sm:$0xf]  ;;  %v2836_v44 = vor.u32 %v4108_v36, %v2835_v35 }
   0xa   :  { %1813 = vmatpush.bf16.msra.mxu2 %v3268_v21  ;;  %v3436_v38 = vor.u32 %v4258_v32, %v3435_v31  ;;  %v4156_v39 = vld [vmem:[%s6436_s1 + $0x254] sm:$0xf0]  ;;  %v3219_v40 = vld [vmem:[%s6436_s1 + $0x3c0] sm:$0xf]  ;;  %v2811_v47 = vld [vmem:[%s6436_s1 + $0x90] sm:$0xf] }
   0xb   :  { %1826 = vmatpush.bf16.msra.mxu3 %v3460_v25  ;;  %v4204_v41 = vld [vmem:[%s6436_s1 + $0x3d4] sm:$0xf0]  ;;  %v3411_v42 = vld [vmem:[%s6436_s1 + $0x540] sm:$0xf]  ;;  %v3028_v45 = vor.u32 %v4156_v39, %v3027_v37  ;;  %v4102_v48 = vld [vmem:[%s6436_s1 + $0xa4] sm:$0xf0] }
   0xc   :  { %v4252_v43 = vld [vmem:[%s6436_s1 + $0x554] sm:$0xf0]  ;;  %1788 = vmatpush.bf16.msra.mxu0 %v2860_v29  ;;  %v3220_v46 = vor.u32 %v4204_v41, %v3219_v40  ;;  %v3003_v49 = vld [vmem:[%s6436_s1 + $0x210] sm:$0xf]  ;;  %v4150_v51 = vld [vmem:[%s6436_s1 + $0x224] sm:$0xf0]  ;;  %v2812_v56 = vor.u32 %v4102_v48, %v2811_v47 }
   0xd   :  { %1801 = vmatpush.bf16.msra.mxu1 %v3052_v33  ;;  %v3412_v50 = vor.u32 %v4252_v43, %v3411_v42  ;;  %v3195_v52 = vld [vmem:[%s6436_s1 + $0x390] sm:$0xf]  ;;  %v4198_v53 = vld [vmem:[%s6436_s1 + $0x3a4] sm:$0xf0]  ;;  %v3004_v57 = vor.u32 %v4150_v51, %v3003_v49  ;;  %v2787_v59 = vld [vmem:[%s6436_s1 + $0x60] sm:$0xf] }
   0xe   :  { %1814 = vmatpush.bf16.msra.mxu2 %v3244_v34  ;;  %v3387_v54 = vld [vmem:[%s6436_s1 + $0x510] sm:$0xf]  ;;  %v4246_v55 = vld [vmem:[%s6436_s1 + $0x524] sm:$0xf0]  ;;  %v3196_v58 = vor.u32 %v4198_v53, %v3195_v52  ;;  %v4096_v60 = vld [vmem:[%s6436_s1 + $0x74] sm:$0xf0] }
   0xf   :  { %1827 = vmatpush.bf16.msra.mxu3 %v3436_v38  ;;  %v2979_v61 = vld [vmem:[%s6436_s1 + $0x1e0] sm:$0xf]  ;;  %v3388_v62 = vor.u32 %v4246_v55, %v3387_v54  ;;  %v4144_v63 = vld [vmem:[%s6436_s1 + $0x1f4] sm:$0xf0]  ;;  %v2788_v4 = vor.u32 %v4096_v60, %v2787_v59  ;;  %v2763_v7 = vld [vmem:[%s6436_s1 + $0x30] sm:$0xf] }
  0x10   :  { %1789 = vmatpush.bf16.msra.mxu0 %v2836_v44  ;;  %v3171_v0 = vld [vmem:[%s6436_s1 + $0x360] sm:$0xf]  ;;  %v4192_v1 = vld [vmem:[%s6436_s1 + $0x374] sm:$0xf0]  ;;  %v2980_v5 = vor.u32 %v4144_v63, %v2979_v61  ;;  %v4090_v8 = vld [vmem:[%s6436_s1 + $0x44] sm:$0xf0] }
  0x11   :  { %1802 = vmatpush.bf16.msra.mxu1 %v3028_v45  ;;  %v3363_v2 = vld [vmem:[%s6436_s1 + $0x4e0] sm:$0xf]  ;;  %v4240_v3 = vld [vmem:[%s6436_s1 + $0x4f4] sm:$0xf0]  ;;  %v3172_v6 = vor.u32 %v4192_v1, %v3171_v0  ;;  %v2955_v9 = vld [vmem:[%s6436_s1 + $0x1b0] sm:$0xf]  ;;  %v2764_v16 = vor.u32 %v4090_v8, %v2763_v7 }
  0x12   :  { %1815 = vmatpush.bf16.msra.mxu2 %v3220_v46  ;;  %v3364_v10 = vor.u32 %v4240_v3, %v3363_v2  ;;  %v4138_v11 = vld [vmem:[%s6436_s1 + $0x1c4] sm:$0xf0]  ;;  %v3147_v12 = vld [vmem:[%s6436_s1 + $0x330] sm:$0xf]  ;;  %v2739_v17 = vld [vmem:[%s6436_s1] sm:$0xf] }
  0x13   :  { %1828 = vmatpush.bf16.msra.mxu3 %v3412_v50  ;;  %v4186_v13 = vld [vmem:[%s6436_s1 + $0x344] sm:$0xf0]  ;;  %v3339_v14 = vld [vmem:[%s6436_s1 + $0x4b0] sm:$0xf]  ;;  %v4084_v18 = vld [vmem:[%s6436_s1 + $0x14] sm:$0xf0]  ;;  %v2956_v19 = vor.u32 %v4138_v11, %v2955_v9 }
  0x14   :  { %1790 = vmatpush.bf16.msra.mxu0 %v2812_v56  ;;  %v4234_v15 = vld [vmem:[%s6436_s1 + $0x4c4] sm:$0xf0]  ;;  %v3148_v20 = vor.u32 %v4186_v13, %v3147_v12  ;;  %v2931_v21 = vld [vmem:[%s6436_s1 + $0x180] sm:$0xf]  ;;  %v4132_v22 = vld [vmem:[%s6436_s1 + $0x194] sm:$0xf0]  ;;  %v2740_v31 = vor.u32 %v4084_v18, %v2739_v17 }
  0x15   :  { %1803 = vmatpush.bf16.msra.mxu1 %v3004_v57  ;;  %v3123_v23 = vld [vmem:[%s6436_s1 + $0x300] sm:$0xf]  ;;  %v3340_v24 = vor.u32 %v4234_v15, %v3339_v14  ;;  %v4180_v25 = vld [vmem:[%s6436_s1 + $0x314] sm:$0xf0]  ;;  %v3675_v28 = vld [vmem:[%s6436_s1 + $0x750] sm:$0xf]  ;;  %v2932_v35 = vor.u32 %v4132_v22, %v2931_v21 }
  0x16   :  { %1816 = vmatpush.bf16.msra.mxu2 %v3196_v58  ;;  %v3315_v26 = vld [vmem:[%s6436_s1 + $0x480] sm:$0xf]  ;;  %v4228_v27 = vld [vmem:[%s6436_s1 + $0x494] sm:$0xf0]  ;;  %v4318_v29 = vld [vmem:[%s6436_s1 + $0x764] sm:$0xf0]  ;;  %v3124_v36 = vor.u32 %v4180_v25, %v3123_v23 }
  0x17   :  { %1829 = vmatpush.bf16.msra.mxu3 %v3388_v62  ;;  %v3867_v30 = vld [vmem:[%s6436_s1 + $0x8d0] sm:$0xf]  ;;  %v4366_v32 = vld [vmem:[%s6436_s1 + $0x8e4] sm:$0xf0]  ;;  %v4123_v33 = vld [vmem:[%s6436_s1 + $0x154] sm:$0xf]  ;;  %v3316_v39 = vor.u32 %v4228_v27, %v3315_v26  ;;  %v3676_v40 = vor.u32 %v4318_v29, %v3675_v28 }
  0x18   :  { %1791 = vmatpush.bf16.msra.mxu0 %v2788_v4  ;;  %v2909_v34 = vld [vmem:[%s6436_s1 + $0x168] sm:$0xf0]  ;;  %v4171_v37 = vld [vmem:[%s6436_s1 + $0x2d4] sm:$0xf]  ;;  %v3868_v41 = vor.u32 %v4366_v32, %v3867_v30  ;;  %v3651_v43 = vld [vmem:[%s6436_s1 + $0x720] sm:$0xf] }
  0x19   :  { %1804 = vmatpush.bf16.msra.mxu1 %v2980_v5  ;;  %v3101_v38 = vld [vmem:[%s6436_s1 + $0x2e8] sm:$0xf0]  ;;  %v2912_v42 = vor.u32 %v4123_v33, %v2909_v34  ;;  %v4312_v44 = vld [vmem:[%s6436_s1 + $0x734] sm:$0xf0]  ;;  %v3843_v45 = vld [vmem:[%s6436_s1 + $0x8a0] sm:$0xf] }
  0x1a   :  { %1817 = vmatpush.bf16.msra.mxu2 %v3172_v6  ;;  %v3104_v46 = vor.u32 %v4171_v37, %v3101_v38  ;;  %v4360_v47 = vld [vmem:[%s6436_s1 + $0x8b4] sm:$0xf0]  ;;  %v4117_v48 = vld [vmem:[%s6436_s1 + $0x124] sm:$0xf]  ;;  %v2885_v49 = vld [vmem:[%s6436_s1 + $0x138] sm:$0xf0]  ;;  %v3652_v52 = vor.u32 %v4312_v44, %v3651_v43 }
  0x1b   :  { %1830 = vmatpush.bf16.msra.mxu3 %v3364_v10  ;;  %v4165_v50 = vld [vmem:[%s6436_s1 + $0x2a4] sm:$0xf]  ;;  %v3077_v51 = vld [vmem:[%s6436_s1 + $0x2b8] sm:$0xf0]  ;;  %v3627_v53 = vld [vmem:[%s6436_s1 + $0x6f0] sm:$0xf]  ;;  %v3844_v54 = vor.u32 %v4360_v47, %v3843_v45  ;;  %v2888_v55 = vor.u32 %v4117_v48, %v2885_v49 }
  0x1c   :  { %1792 = vmatpush.bf16.msra.mxu0 %v2764_v16  ;;  %v4306_v56 = vld [vmem:[%s6436_s1 + $0x704] sm:$0xf0]  ;;  %v3819_v57 = vld [vmem:[%s6436_s1 + $0x870] sm:$0xf]  ;;  %v3080_v59 = vor.u32 %v4165_v50, %v3077_v51  ;;  %v4111_v60 = vld [vmem:[%s6436_s1 + $0xf4] sm:$0xf] }
  0x1d   :  { %1805 = vmatpush.bf16.msra.mxu1 %v2956_v19  ;;  %v4354_v58 = vld [vmem:[%s6436_s1 + $0x884] sm:$0xf0]  ;;  %v2861_v61 = vld [vmem:[%s6436_s1 + $0x108] sm:$0xf0]  ;;  %v4159_v62 = vld [vmem:[%s6436_s1 + $0x274] sm:$0xf]  ;;  %v3628_v0 = vor.u32 %v4306_v56, %v3627_v53 }
  0x1e   :  { %1818 = vmatpush.bf16.msra.mxu2 %v3148_v20  ;;  %v3053_v63 = vld [vmem:[%s6436_s1 + $0x288] sm:$0xf0]  ;;  %v3820_v1 = vor.u32 %v4354_v58, %v3819_v57  ;;  %v20_v3 = vld [vmem:[%s6437_s0] sm:$0xff]  ;;  %v2864_v4 = vor.u32 %v4111_v60, %v2861_v61  ;;  %v4300_v6 = vld [vmem:[%s6436_s1 + $0x6d4] sm:$0xf0] }
  0x1f   :  { %1831 = vmatpush.bf16.msra.mxu3 %v3340_v24  ;;  %v21_v2 = vld [vmem:[%s6437_s0 + $0x8] sm:$0xff]  ;;  %v3603_v5 = vld [vmem:[%s6436_s1 + $0x6c0] sm:$0xf]  ;;  %v328_v9 = vunpack.c.l.b16 %v20_v3  ;;  %v3056_v11 = vor.u32 %v4159_v62, %v3053_v63  ;;  %v4348_v12 = vld [vmem:[%s6436_s1 + $0x854] sm:$0xf0]  ;;  %v329_v15 = vunpack.c.h.b16 %v20_v3 }
  0x20   :  { %1793 = vmatpush.bf16.msra.mxu0 %v2740_v31  ;;  %v3795_v7 = vld [vmem:[%s6436_s1 + $0x840] sm:$0xf]  ;;  %v330_v8 = vunpack.c.l.b16 %v21_v2  ;;  %v331_v10 = vunpack.c.h.b16 %v21_v2  ;;  %v4105_v13 = vld [vmem:[%s6436_s1 + $0xc4] sm:$0xf]  ;;  %v2837_v14 = vld [vmem:[%s6436_s1 + $0xd8] sm:$0xf0]  ;;  %v3604_v21 = vor.u32 %v4300_v6, %v3603_v5 }
  0x21   :  { %1806 = vmatpush.bf16.msra.mxu1 %v2932_v35  ;;  %v4153_v16 = vld [vmem:[%s6436_s1 + $0x244] sm:$0xf]  ;;  %v3029_v17 = vld [vmem:[%s6436_s1 + $0x258] sm:$0xf0]  ;;  %v4757_v19 = vpack.c.b16 %v328_v9, %v328_v9  ;;  %v4761_v22 = vpack.c.b16 %v329_v15, %v329_v15  ;;  %v3796_v23 = vor.u32 %v4348_v12, %v3795_v7  ;;  %v2840_v24 = vor.u32 %v4105_v13, %v2837_v14  ;;  %v3579_v25 = vld [vmem:[%s6436_s1 + $0x690] sm:$0xf] }
  0x22   :  { %1819 = vmatpush.bf16.msra.mxu2 %v3124_v36  ;;  %v4755_v18 = vpack.c.b16 %v330_v8, %v330_v8  ;;  %v4759_v20 = vpack.c.b16 %v331_v10, %v331_v10  ;;  %v4294_v26 = vld [vmem:[%s6436_s1 + $0x6a4] sm:$0xf0]  ;;  %v3771_v27 = vld [vmem:[%s6436_s1 + $0x810] sm:$0xf]  ;;  %v3032_v28 = vor.u32 %v4153_v16, %v3029_v17  ;;  %v4099_v30 = vld [vmem:[%s6436_s1 + $0x94] sm:$0xf] }
  0x23   :  { %1832 = vmatpush.bf16.msra.mxu3 %v3316_v39  ;;  %v4342_v29 = vld [vmem:[%s6436_s1 + $0x824] sm:$0xf0]  ;;  %v2813_v31 = vld [vmem:[%s6436_s1 + $0xa8] sm:$0xf0]  ;;  %v4147_v32 = vld [vmem:[%s6436_s1 + $0x214] sm:$0xf]  ;;  %1794 = vmatmul.bf16.vlgmr.msra.gmra.mxu0 %v4757_v19  ;;  %v3580_v34 = vor.u32 %v4294_v26, %v3579_v25 }
  0x24   :  { %1838 = vmatpush.bf16.msrb.mxu0 %v3676_v40  ;;  %v3005_v33 = vld [vmem:[%s6436_s1 + $0x228] sm:$0xf0]  ;;  %1807 = vmatmul.bf16.vlgmr.msra.gmra.mxu1 %v4761_v22  ;;  %v3772_v35 = vor.u32 %v4342_v29, %v3771_v27  ;;  %v2816_v36 = vor.u32 %v4099_v30, %v2813_v31  ;;  %v3555_v37 = vld [vmem:[%s6436_s1 + $0x660] sm:$0xf]  ;;  %v4288_v38 = vld [vmem:[%s6436_s1 + $0x674] sm:$0xf0] }
  0x25   :  { %1851 = vmatpush.bf16.msrb.mxu1 %v3868_v41  ;;  %1820 = vmatmul.bf16.vlgmr.msra.gmra.mxu2 %v4755_v18  ;;  %v3747_v39 = vld [vmem:[%s6436_s1 + $0x7e0] sm:$0xf]  ;;  %v3008_v40 = vor.u32 %v4147_v32, %v3005_v33  ;;  %v4336_v41 = vld [vmem:[%s6436_s1 + $0x7f4] sm:$0xf0]  ;;  %v2789_v43 = vld [vmem:[%s6436_s1 + $0x78] sm:$0xf0] }
  0x26   :  { %1864 = vmatpush.bf16.msrb.mxu2 %v2912_v42  ;;  %1833 = vmatmul.bf16.vlgmr.msra.gmra.mxu3 %v4759_v20  ;;  %v4093_v42 = vld [vmem:[%s6436_s1 + $0x64] sm:$0xf]  ;;  %v2981_v45 = vld [vmem:[%s6436_s1 + $0x1f8] sm:$0xf0]  ;;  %v3748_v47 = vor.u32 %v4336_v41, %v3747_v39  ;;  %v3531_v49 = vld [vmem:[%s6436_s1 + $0x630] sm:$0xf] }
  0x27   :  { %1877 = vmatpush.bf16.msrb.mxu3 %v3104_v46  ;;  %v4141_v44 = vld [vmem:[%s6436_s1 + $0x1e4] sm:$0xf]  ;;  %v3556_v46 = vor.u32 %v4288_v38, %v3555_v37  ;;  %v2792_v48 = vor.u32 %v4093_v42, %v2789_v43  ;;  %v4282_v50 = vld [vmem:[%s6436_s1 + $0x644] sm:$0xf0]  ;;  %v3723_v51 = vld [vmem:[%s6436_s1 + $0x7b0] sm:$0xf] }
  0x28   :  { %1839 = vmatpush.bf16.msrb.mxu0 %v3652_v52  ;;  %v2984_v52 = vor.u32 %v4141_v44, %v2981_v45  ;;  %v4330_v53 = vld [vmem:[%s6436_s1 + $0x7c4] sm:$0xf0]  ;;  %v4135_v56 = vld [vmem:[%s6436_s1 + $0x1b4] sm:$0xf]  ;;  %v2957_v57 = vld [vmem:[%s6436_s1 + $0x1c8] sm:$0xf0]  ;;  %v3532_v58 = vor.u32 %v4282_v50, %v3531_v49 }
  0x29   :  { %1852 = vmatpush.bf16.msrb.mxu1 %v3844_v54  ;;  %v4087_v54 = vld [vmem:[%s6436_s1 + $0x34] sm:$0xf]  ;;  %v4276_v60 = vld [vmem:[%s6436_s1 + $0x614] sm:$0xf0]  ;;  %v3699_v61 = vld [vmem:[%s6436_s1 + $0x780] sm:$0xf]  ;;  %v3724_v62 = vor.u32 %v4330_v53, %v3723_v51  ;;  %v2960_v3 = vor.u32 %v4135_v56, %v2957_v57 }
  0x2a   :  { %1865 = vmatpush.bf16.msrb.mxu2 %v2888_v55  ;;  %v2765_v55 = vld [vmem:[%s6436_s1 + $0x48] sm:$0xf0]  ;;  %v22_v2 = vld [vmem:[%s6437_s0 + $0x10] sm:$0xff]  ;;  %v4129_v5 = vld [vmem:[%s6436_s1 + $0x184] sm:$0xf] }
  0x2b   :  { %1878 = vmatpush.bf16.msrb.mxu3 %v3080_v59  ;;  %v3507_v59 = vld [vmem:[%s6436_s1 + $0x600] sm:$0xf]  ;;  %v2768_v63 = vor.u32 %v4087_v54, %v2765_v55  ;;  %v2933_v6 = vld [vmem:[%s6436_s1 + $0x198] sm:$0xf0]  ;;  %v4219_v7 = vld [vmem:[%s6436_s1 + $0x454] sm:$0xf]  ;;  %v332_v14 = vunpack.c.l.b16 %v22_v2 }
  0x2c   :  { %1840 = vmatpush.bf16.msrb.mxu0 %v3628_v0  ;;  %v4324_v0 = vld [vmem:[%s6436_s1 + $0x794] sm:$0xf0]  ;;  %v3293_v8 = vld [vmem:[%s6436_s1 + $0x468] sm:$0xf0]  ;;  %v4267_v9 = vld [vmem:[%s6436_s1 + $0x5d4] sm:$0xf]  ;;  %v3508_v10 = vor.u32 %v4276_v60, %v3507_v59 }
  0x2d   :  { %1853 = vmatpush.bf16.msrb.mxu1 %v3820_v1  ;;  %v4081_v1 = vld [vmem:[%s6436_s1 + $0x4] sm:$0xf]  ;;  %v4315_v12 = vld [vmem:[%s6436_s1 + $0x754] sm:$0xf]  ;;  %v3677_v13 = vld [vmem:[%s6436_s1 + $0x768] sm:$0xf0]  ;;  %v3700_v15 = vor.u32 %v4324_v0, %v3699_v61  ;;  %v3296_v25 = vor.u32 %v4219_v7, %v3293_v8 }
  0x2e   :  { %1866 = vmatpush.bf16.msrb.mxu2 %v2864_v4  ;;  %v2741_v4 = vld [vmem:[%s6436_s1 + $0x18] sm:$0xf0]  ;;  %v4363_v17 = vld [vmem:[%s6436_s1 + $0x8d4] sm:$0xf]  ;;  %v3680_v27 = vor.u32 %v4315_v12, %v3677_v13  ;;  %v4261_v30 = vld [vmem:[%s6436_s1 + $0x5a4] sm:$0xf] }
  0x2f   :  { %1879 = vmatpush.bf16.msrb.mxu3 %v3056_v11  ;;  %v3485_v11 = vld [vmem:[%s6436_s1 + $0x5e8] sm:$0xf0]  ;;  %v2744_v16 = vor.u32 %v4081_v1, %v2741_v4  ;;  %v3269_v29 = vld [vmem:[%s6436_s1 + $0x438] sm:$0xf0]  ;;  %v4309_v33 = vld [vmem:[%s6436_s1 + $0x724] sm:$0xf] }
  0x30   :  { %1841 = vmatpush.bf16.msrb.mxu0 %v3604_v21  ;;  %v3869_v21 = vld [vmem:[%s6436_s1 + $0x8e8] sm:$0xf0]  ;;  %v3488_v26 = vor.u32 %v4267_v9, %v3485_v11  ;;  %v3461_v32 = vld [vmem:[%s6436_s1 + $0x5b8] sm:$0xf0]  ;;  %v4207_v42 = vld [vmem:[%s6436_s1 + $0x3f4] sm:$0xf] }
  0x31   :  { %1854 = vmatpush.bf16.msrb.mxu1 %v3796_v23  ;;  %v333_v23 = vunpack.c.h.b16 %v22_v2  ;;  %v3872_v31 = vor.u32 %v4363_v17, %v3869_v21  ;;  %v3845_v37 = vld [vmem:[%s6436_s1 + $0x8b8] sm:$0xf0]  ;;  %v3245_v43 = vld [vmem:[%s6436_s1 + $0x408] sm:$0xf0]  ;;  %v4255_v44 = vld [vmem:[%s6436_s1 + $0x574] sm:$0xf] }
  0x32   :  { %1867 = vmatpush.bf16.msrb.mxu2 %v2840_v24  ;;  %v2936_v24 = vor.u32 %v4129_v5, %v2933_v6  ;;  %v4351_v49 = vld [vmem:[%s6436_s1 + $0x874] sm:$0xf]  ;;  %v3821_v50 = vld [vmem:[%s6436_s1 + $0x888] sm:$0xf0]  ;;  %v3248_v51 = vor.u32 %v4207_v42, %v3245_v43  ;;  %v4201_v54 = vld [vmem:[%s6436_s1 + $0x3c4] sm:$0xf] }
  0x33   :  { %1880 = vmatpush.bf16.msrb.mxu3 %v3032_v28  ;;  %v4213_v28 = vld [vmem:[%s6436_s1 + $0x424] sm:$0xf]  ;;  %v4916_v38 = vpack.c.b16 %v333_v23, %v333_v23  ;;  %v3221_v55 = vld [vmem:[%s6436_s1 + $0x3d8] sm:$0xf0]  ;;  %v3824_v57 = vor.u32 %v4351_v49, %v3821_v50  ;;  %v4195_v2 = vld [vmem:[%s6436_s1 + $0x394] sm:$0xf] }
  0x34   :  { %1842 = vmatpush.bf16.msrb.mxu0 %v3580_v34  ;;  %v3653_v34 = vld [vmem:[%s6436_s1 + $0x738] sm:$0xf0]  ;;  %v3272_v39 = vor.u32 %v4213_v28, %v3269_v29  ;;  %v4249_v56 = vld [vmem:[%s6436_s1 + $0x544] sm:$0xf]  ;;  %v4243_v4 = vld [vmem:[%s6436_s1 + $0x514] sm:$0xf] }
  0x35   :  { %1855 = vmatpush.bf16.msrb.mxu1 %v3772_v35  ;;  %v4908_v35 = vpack.c.b16 %v332_v14, %v332_v14  ;;  %v3656_v41 = vor.u32 %v4309_v33, %v3653_v34  ;;  %v4297_v59 = vld [vmem:[%s6436_s1 + $0x6c4] sm:$0xf]  ;;  %v3605_v60 = vld [vmem:[%s6436_s1 + $0x6d8] sm:$0xf0]  ;;  %v3389_v6 = vld [vmem:[%s6436_s1 + $0x528] sm:$0xf0] }
  0x36   :  { %1868 = vmatpush.bf16.msrb.mxu2 %v2816_v36  ;;  %v4357_v36 = vld [vmem:[%s6436_s1 + $0x8a4] sm:$0xf]  ;;  %v3608_v1 = vor.u32 %v4297_v59, %v3605_v60  ;;  %v4291_v7 = vld [vmem:[%s6436_s1 + $0x694] sm:$0xf]  ;;  %v3581_v8 = vld [vmem:[%s6436_s1 + $0x6a8] sm:$0xf0]  ;;  %v3392_v12 = vor.u32 %v4243_v4, %v3389_v6 }
  0x37   :  { %1881 = vmatpush.bf16.msrb.mxu3 %v3008_v40  ;;  %v3464_v40 = vor.u32 %v4261_v30, %v3461_v32  ;;  %v3848_v45 = vor.u32 %v4357_v36, %v3845_v37  ;;  %v4345_v61 = vld [vmem:[%s6436_s1 + $0x844] sm:$0xf]  ;;  %v4339_v9 = vld [vmem:[%s6436_s1 + $0x814] sm:$0xf]  ;;  %v3584_v13 = vor.u32 %v4291_v7, %v3581_v8  ;;  %v3365_v21 = vld [vmem:[%s6436_s1 + $0x4f8] sm:$0xf0] }
  0x38   :  { %1843 = vmatpush.bf16.msrb.mxu0 %v3556_v46  ;;  %v3437_v46 = vld [vmem:[%s6436_s1 + $0x588] sm:$0xf0]  ;;  %v4189_v14 = vld [vmem:[%s6436_s1 + $0x364] sm:$0xf]  ;;  %v4183_v30 = vld [vmem:[%s6436_s1 + $0x334] sm:$0xf] }
  0x39   :  { %1856 = vmatpush.bf16.msrb.mxu1 %v3748_v47  ;;  %v4303_v47 = vld [vmem:[%s6436_s1 + $0x6f4] sm:$0xf]  ;;  %v4285_v23 = vld [vmem:[%s6436_s1 + $0x664] sm:$0xf]  ;;  %v3341_v34 = vld [vmem:[%s6436_s1 + $0x4c8] sm:$0xf0] }
  0x3a   :  { %1869 = vmatpush.bf16.msrb.mxu2 %v2792_v48  ;;  %v3629_v48 = vld [vmem:[%s6436_s1 + $0x708] sm:$0xf0]  ;;  %v4231_v32 = vld [vmem:[%s6436_s1 + $0x4b4] sm:$0xf]  ;;  %v4177_v42 = vld [vmem:[%s6436_s1 + $0x304] sm:$0xf] }
  0x3b   :  { %1882 = vmatpush.bf16.msrb.mxu3 %v2984_v52  ;;  %v3440_v52 = vor.u32 %v4255_v44, %v3437_v46  ;;  %v3632_v53 = vor.u32 %v4303_v47, %v3629_v48  ;;  %v4279_v36 = vld [vmem:[%s6436_s1 + $0x634] sm:$0xf]  ;;  %v3533_v37 = vld [vmem:[%s6436_s1 + $0x648] sm:$0xf0]  ;;  %v3125_v43 = vld [vmem:[%s6436_s1 + $0x318] sm:$0xf0]  ;;  %v3344_v44 = vor.u32 %v4231_v32, %v3341_v34 }
  0x3c   :  { %1844 = vmatpush.bf16.msrb.mxu0 %v3532_v58  ;;  %v3413_v58 = vld [vmem:[%s6436_s1 + $0x558] sm:$0xf0]  ;;  %v4225_v46 = vld [vmem:[%s6436_s1 + $0x484] sm:$0xf]  ;;  %v4223_v59 = vld [vmem:[%s6436_s1 + $0x46c] sm:$0xf0] }
  0x3d   :  { %1857 = vmatpush.bf16.msrb.mxu1 %v3724_v62  ;;  %v3797_v62 = vld [vmem:[%s6436_s1 + $0x858] sm:$0xf0]  ;;  %v3416_v0 = vor.u32 %v4249_v56, %v3413_v58  ;;  %v4273_v48 = vld [vmem:[%s6436_s1 + $0x604] sm:$0xf]  ;;  %v3128_v56 = vor.u32 %v4177_v42, %v3125_v43  ;;  %v3299_v58 = vld [vmem:[%s6436_s1 + $0x458] sm:$0xf] }
  0x3e   :  { %1870 = vmatpush.bf16.msrb.mxu2 %v2768_v63  ;;  %v3224_v63 = vor.u32 %v4201_v54, %v3221_v55  ;;  %v3800_v5 = vor.u32 %v4345_v61, %v3797_v62  ;;  %v3317_v47 = vld [vmem:[%s6436_s1 + $0x498] sm:$0xf0]  ;;  %v4127_v54 = vld [vmem:[%s6436_s1 + $0x16c] sm:$0xf0]  ;;  %v3107_v55 = vld [vmem:[%s6436_s1 + $0x2d8] sm:$0xf] }
  0x3f   :  { %1883 = vmatpush.bf16.msrb.mxu3 %v2960_v3  ;;  %v3197_v3 = vld [vmem:[%s6436_s1 + $0x3a8] sm:$0xf0]  ;;  %v3509_v50 = vld [vmem:[%s6436_s1 + $0x618] sm:$0xf0]  ;;  %v3320_v60 = vor.u32 %v4225_v46, %v3317_v47  ;;  %v3491_v62 = vld [vmem:[%s6436_s1 + $0x5d8] sm:$0xf] }
  0x40   :  { %1845 = vmatpush.bf16.msrb.mxu0 %v3508_v10  ;;  %v3773_v10 = vld [vmem:[%s6436_s1 + $0x828] sm:$0xf0]  ;;  %v3200_v11 = vor.u32 %v4195_v2, %v3197_v3  ;;  %v3512_v61 = vor.u32 %v4273_v48, %v3509_v50  ;;  %v3300_v3 = vor.u32 %v4223_v59, %v3299_v58  ;;  %v2891_v4 = vld [vmem:[%s6436_s1 + $0x128] sm:$0xf]  ;;  %v4169_v8 = vld [vmem:[%s6436_s1 + $0x2bc] sm:$0xf0] }
  0x41   :  { %1858 = vmatpush.bf16.msrb.mxu1 %v3700_v15  ;;  %v3173_v15 = vld [vmem:[%s6436_s1 + $0x378] sm:$0xf0]  ;;  %v3776_v17 = vor.u32 %v4339_v9, %v3773_v10  ;;  %v3083_v6 = vld [vmem:[%s6436_s1 + $0x2a8] sm:$0xf]  ;;  %v4217_v10 = vld [vmem:[%s6436_s1 + $0x43c] sm:$0xf0] }
  0x42   :  { %1871 = vmatpush.bf16.msrb.mxu2 %v2744_v16  ;;  %v4237_v16 = vld [vmem:[%s6436_s1 + $0x4e4] sm:$0xf]  ;;  %v3275_v9 = vld [vmem:[%s6436_s1 + $0x428] sm:$0xf]  ;;  %v4253_v42 = vld [vmem:[%s6436_s1 + $0x55c] sm:$0xf0] }
  0x43   :  { %1884 = vmatpush.bf16.msrb.mxu3 %v2936_v24  ;;  %1846 = vmatmul.bf16.vlgmr.msrb.gmra.mxu0 %v4908_v35  ;;  %v3557_v24 = vld [vmem:[%s6436_s1 + $0x678] sm:$0xf0]  ;;  %v3368_v28 = vor.u32 %v4237_v16, %v3365_v21  ;;  %v2867_v16 = vld [vmem:[%s6436_s1 + $0xf8] sm:$0xf]  ;;  %v2843_v32 = vld [vmem:[%s6436_s1 + $0xc8] sm:$0xf] }
  0x44   :  { %1890 = vmatpush.bf16.msra.mxu0 %v3296_v25  ;;  %1859 = vmatmul.bf16.vlgmr.msrb.gmra.mxu1 %v4916_v38  ;;  %v4333_v25 = vld [vmem:[%s6436_s1 + $0x7e4] sm:$0xf]  ;;  %v3560_v29 = vor.u32 %v4285_v23, %v3557_v24  ;;  %v3059_v21 = vld [vmem:[%s6436_s1 + $0x278] sm:$0xf]  ;;  %v4163_v24 = vld [vmem:[%s6436_s1 + $0x28c] sm:$0xf0] }
  0x45   :  { %1903 = vmatpush.bf16.msra.mxu1 %v3488_v26  ;;  %1872 = vmatmul.bf16.vlgmr.msrb.gmra.mxu2 %v4757_v19  ;;  %v3749_v26 = vld [vmem:[%s6436_s1 + $0x7f8] sm:$0xf0]  ;;  %v3035_v34 = vld [vmem:[%s6436_s1 + $0x248] sm:$0xf]  ;;  %v2819_v46 = vld [vmem:[%s6436_s1 + $0x98] sm:$0xf] }
  0x46   :  { %1916 = vmatpush.bf16.msra.mxu2 %v3680_v27  ;;  %1885 = vmatmul.bf16.vlgmr.msrb.gmra.mxu3 %v4761_v22  ;;  %v3176_v27 = vor.u32 %v4189_v14, %v3173_v15  ;;  %v3752_v33 = vor.u32 %v4333_v25, %v3749_v26  ;;  %v3084_v14 = vor.u32 %v4169_v8, %v3083_v6  ;;  %v3251_v25 = vld [vmem:[%s6436_s1 + $0x3f8] sm:$0xf]  ;;  %v4211_v26 = vld [vmem:[%s6436_s1 + $0x40c] sm:$0xf0]  ;;  %v2795_v58 = vld [vmem:[%s6436_s1 + $0x68] sm:$0xf] }
  0x47   :  { %1929 = vmatpush.bf16.msra.mxu3 %v3872_v31  ;;  %v3149_v31 = vld [vmem:[%s6436_s1 + $0x348] sm:$0xf0]  ;;  %v3276_v15 = vor.u32 %v4217_v10, %v3275_v9  ;;  %v4103_v47 = vld [vmem:[%s6436_s1 + $0xac] sm:$0xf0]  ;;  %v3011_v48 = vld [vmem:[%s6436_s1 + $0x218] sm:$0xf] }
  0x48   :  { %1891 = vmatpush.bf16.msra.mxu0 %v3272_v39  ;;  %v4327_v39 = vld [vmem:[%s6436_s1 + $0x7b4] sm:$0xf]  ;;  %v4151_v50 = vld [vmem:[%s6436_s1 + $0x22c] sm:$0xf0]  ;;  %v4097_v59 = vld [vmem:[%s6436_s1 + $0x7c] sm:$0xf0] }
  0x49   :  { %1904 = vmatpush.bf16.msra.mxu1 %v3464_v40  ;;  %v3725_v40 = vld [vmem:[%s6436_s1 + $0x7c8] sm:$0xf0]  ;;  %v2771_v6 = vld [vmem:[%s6436_s1 + $0x38] sm:$0xf]  ;;  %v4139_v10 = vld [vmem:[%s6436_s1 + $0x1cc] sm:$0xf0] }
  0x4a   :  { %1917 = vmatpush.bf16.msra.mxu2 %v3656_v41  ;;  %v3152_v41 = vor.u32 %v4183_v30, %v3149_v31  ;;  %v3728_v49 = vor.u32 %v4327_v39, %v3725_v40  ;;  %v3060_v30 = vor.u32 %v4163_v24, %v3059_v21  ;;  %v3252_v31 = vor.u32 %v4211_v26, %v3251_v25  ;;  %v3227_v39 = vld [vmem:[%s6436_s1 + $0x3c8] sm:$0xf]  ;;  %v4205_v40 = vld [vmem:[%s6436_s1 + $0x3dc] sm:$0xf0]  ;;  %v2963_v8 = vld [vmem:[%s6436_s1 + $0x1b8] sm:$0xf] }
  0x4b   :  { %1930 = vmatpush.bf16.msra.mxu3 %v3848_v45  ;;  %v3536_v45 = vor.u32 %v4279_v36, %v3533_v37  ;;  %v4157_v37 = vld [vmem:[%s6436_s1 + $0x25c] sm:$0xf0]  ;;  %v2964_v21 = vor.u32 %v4139_v10, %v2963_v8  ;;  %v2939_v24 = vld [vmem:[%s6436_s1 + $0x188] sm:$0xf] }
  0x4c   :  { %1892 = vmatpush.bf16.msra.mxu0 %v3248_v51  ;;  %v4321_v51 = vld [vmem:[%s6436_s1 + $0x784] sm:$0xf]  ;;  %v4133_v25 = vld [vmem:[%s6436_s1 + $0x19c] sm:$0xf0]  ;;  %v3131_v26 = vld [vmem:[%s6436_s1 + $0x308] sm:$0xf] }
  0x4d   :  { %1905 = vmatpush.bf16.msra.mxu1 %v3440_v52  ;;  %v3701_v52 = vld [vmem:[%s6436_s1 + $0x798] sm:$0xf0]  ;;  %v3611_v8 = vld [vmem:[%s6436_s1 + $0x6c8] sm:$0xf] }
  0x4e   :  { %1918 = vmatpush.bf16.msra.mxu2 %v3632_v53  ;;  %v2915_v53 = vld [vmem:[%s6436_s1 + $0x158] sm:$0xf]  ;;  %v3803_v10 = vld [vmem:[%s6436_s1 + $0x848] sm:$0xf] }
  0x4f   :  { %1931 = vmatpush.bf16.msra.mxu3 %v3824_v57  ;;  %v4175_v57 = vld [vmem:[%s6436_s1 + $0x2ec] sm:$0xf0] }
  0x50   :  { %1893 = vmatpush.bf16.msra.mxu0 %v3224_v63  ;;  %v4271_v63 = vld [vmem:[%s6436_s1 + $0x5ec] sm:$0xf0]  ;;  %v3108_v2 = vor.u32 %v4175_v57, %v3107_v55  ;;  %v2820_v55 = vor.u32 %v4103_v47, %v2819_v46 }
  0x51   :  { %1906 = vmatpush.bf16.msra.mxu1 %v3416_v0  ;;  %v3704_v0 = vor.u32 %v4321_v51, %v3701_v52  ;;  %v3492_v7 = vor.u32 %v4271_v63, %v3491_v62  ;;  %v3203_v51 = vld [vmem:[%s6436_s1 + $0x398] sm:$0xf]  ;;  %v4199_v52 = vld [vmem:[%s6436_s1 + $0x3ac] sm:$0xf0]  ;;  %v4145_v62 = vld [vmem:[%s6436_s1 + $0x1fc] sm:$0xf0] }
  0x52   :  { %1919 = vmatpush.bf16.msra.mxu2 %v3608_v1  ;;  %v2916_v1 = vor.u32 %v4127_v54, %v2915_v53  ;;  %v3395_v53 = vld [vmem:[%s6436_s1 + $0x518] sm:$0xf]  ;;  %v4247_v54 = vld [vmem:[%s6436_s1 + $0x52c] sm:$0xf0]  ;;  %v3204_v57 = vor.u32 %v4199_v52, %v3203_v51  ;;  %v3179_v63 = vld [vmem:[%s6436_s1 + $0x368] sm:$0xf] }
  0x53   :  { %1932 = vmatpush.bf16.msra.mxu3 %v3800_v5  ;;  %v4121_v5 = vld [vmem:[%s6436_s1 + $0x13c] sm:$0xf0] }
  0x54   :  { %1894 = vmatpush.bf16.msra.mxu0 %v3200_v11  ;;  %v3467_v11 = vld [vmem:[%s6436_s1 + $0x5a8] sm:$0xf]  ;;  %v4361_v52 = vld [vmem:[%s6436_s1 + $0x8bc] sm:$0xf0] }
  0x55   :  { %1907 = vmatpush.bf16.msra.mxu1 %v3392_v12  ;;  %v4265_v12 = vld [vmem:[%s6436_s1 + $0x5bc] sm:$0xf0] }
  0x56   :  { %1920 = vmatpush.bf16.msra.mxu2 %v3584_v13  ;;  %v2892_v13 = vor.u32 %v4121_v5, %v2891_v4  ;;  %v3468_v23 = vor.u32 %v4265_v12, %v3467_v11  ;;  %v3155_v11 = vld [vmem:[%s6436_s1 + $0x338] sm:$0xf]  ;;  %v4187_v12 = vld [vmem:[%s6436_s1 + $0x34c] sm:$0xf0] }
  0x57   :  { %1933 = vmatpush.bf16.msra.mxu3 %v3776_v17  ;;  %v4115_v17 = vld [vmem:[%s6436_s1 + $0x10c] sm:$0xf0] }
  0x58   :  { %1895 = vmatpush.bf16.msra.mxu0 %v3176_v27  ;;  %v3443_v27 = vld [vmem:[%s6436_s1 + $0x578] sm:$0xf] }
  0x59   :  { %1908 = vmatpush.bf16.msra.mxu1 %v3368_v28  ;;  %v4259_v28 = vld [vmem:[%s6436_s1 + $0x58c] sm:$0xf0] }
  0x5a   :  { %1921 = vmatpush.bf16.msra.mxu2 %v3560_v29  ;;  %v2868_v29 = vor.u32 %v4115_v17, %v2867_v16  ;;  %v3444_v36 = vor.u32 %v4259_v28, %v3443_v27  ;;  %v2747_v16 = vld [vmem:[%s6436_s1 + $0x8] sm:$0xf]  ;;  %v4085_v17 = vld [vmem:[%s6436_s1 + $0x1c] sm:$0xf0] }
  0x5b   :  { %1934 = vmatpush.bf16.msra.mxu3 %v3752_v33  ;;  %v4109_v33 = vld [vmem:[%s6436_s1 + $0xdc] sm:$0xf0] }
  0x5c   :  { %1896 = vmatpush.bf16.msra.mxu0 %v3152_v41  ;;  %v3419_v41 = vld [vmem:[%s6436_s1 + $0x548] sm:$0xf]  ;;  %v2844_v43 = vor.u32 %v4109_v33, %v2843_v32  ;;  %v4181_v28 = vld [vmem:[%s6436_s1 + $0x31c] sm:$0xf0]  ;;  %v4319_v32 = vld [vmem:[%s6436_s1 + $0x76c] sm:$0xf0] }
  0x5d   :  { %1909 = vmatpush.bf16.msra.mxu1 %v3344_v44  ;;  %v3036_v44 = vor.u32 %v4157_v37, %v3035_v34  ;;  %v3875_v33 = vld [vmem:[%s6436_s1 + $0x8d8] sm:$0xf]  ;;  %v2748_v34 = vor.u32 %v4085_v17, %v2747_v16  ;;  %v4124_v37 = vld [vmem:[%s6436_s1 + $0x15c] sm:$0xf]  ;;  %v3037_v16 = vld [vmem:[%s6436_s1 + $0x260] sm:$0xf0] }
  0x5e   :  { %1922 = vmatpush.bf16.msra.mxu2 %v3536_v45  ;;  %v3228_v45 = vor.u32 %v4205_v40, %v3227_v39  ;;  %v2917_v39 = vld [vmem:[%s6436_s1 + $0x170] sm:$0xf0]  ;;  %v2940_v40 = vor.u32 %v4133_v25, %v2939_v24  ;;  %v3587_v24 = vld [vmem:[%s6436_s1 + $0x698] sm:$0xf]  ;;  %v4295_v25 = vld [vmem:[%s6436_s1 + $0x6ac] sm:$0xf0] }
  0x5f   :  { %1935 = vmatpush.bf16.msra.mxu3 %v3728_v49  ;;  %v3420_v49 = vor.u32 %v4253_v42, %v3419_v41  ;;  %v3132_v41 = vor.u32 %v4181_v28, %v3131_v26  ;;  %v4172_v42 = vld [vmem:[%s6436_s1 + $0x2dc] sm:$0xf]  ;;  %v2920_v47 = vor.u32 %v4124_v37, %v2917_v39  ;;  %v3779_v26 = vld [vmem:[%s6436_s1 + $0x818] sm:$0xf]  ;;  %v4343_v28 = vld [vmem:[%s6436_s1 + $0x82c] sm:$0xf0] }
  0x60   :  { %1897 = vmatpush.bf16.msra.mxu0 %v3128_v56  ;;  %v3012_v56 = vor.u32 %v4151_v50, %v3011_v48  ;;  %v3659_v48 = vld [vmem:[%s6436_s1 + $0x728] sm:$0xf]  ;;  %v4289_v39 = vld [vmem:[%s6436_s1 + $0x67c] sm:$0xf0] }
  0x61   :  { %1910 = vmatpush.bf16.msra.mxu1 %v3320_v60  ;;  %v2987_v60 = vld [vmem:[%s6436_s1 + $0x1e8] sm:$0xf] }
  0x62   :  { %1923 = vmatpush.bf16.msra.mxu2 %v3512_v61  ;;  %v3396_v61 = vor.u32 %v4247_v54, %v3395_v53  ;;  %v2988_v4 = vor.u32 %v4145_v62, %v2987_v60  ;;  %v3851_v50 = vld [vmem:[%s6436_s1 + $0x8a8] sm:$0xf]  ;;  %v4118_v53 = vld [vmem:[%s6436_s1 + $0x12c] sm:$0xf]  ;;  %v2893_v54 = vld [vmem:[%s6436_s1 + $0x140] sm:$0xf0] }
  0x63   :  { %1936 = vmatpush.bf16.msra.mxu3 %v3704_v0  ;;  %1898 = vmatmul.bf16.vlgmr.msra.gmra.mxu0 %v4755_v18  ;;  %v4193_v0 = vld [vmem:[%s6436_s1 + $0x37c] sm:$0xf0]  ;;  %v3635_v60 = vld [vmem:[%s6436_s1 + $0x6f8] sm:$0xf]  ;;  %v3563_v37 = vld [vmem:[%s6436_s1 + $0x668] sm:$0xf] }
  0x64   :  { %1942 = vmatpush.bf16.msrb.mxu0 %v2916_v1  ;;  %1911 = vmatmul.bf16.vlgmr.msra.gmra.mxu1 %v4759_v20  ;;  %v3371_v1 = vld [vmem:[%s6436_s1 + $0x4e8] sm:$0xf]  ;;  %v3180_v5 = vor.u32 %v4193_v0, %v3179_v63  ;;  %v3827_v62 = vld [vmem:[%s6436_s1 + $0x878] sm:$0xf]  ;;  %v4355_v0 = vld [vmem:[%s6436_s1 + $0x88c] sm:$0xf0] }
  0x65   :  { %1955 = vmatpush.bf16.msrb.mxu1 %v3108_v2  ;;  %1924 = vmatmul.bf16.vlgmr.msra.gmra.mxu2 %v4908_v35  ;;  %v4241_v2 = vld [vmem:[%s6436_s1 + $0x4fc] sm:$0xf0] }
  0x66   :  { %1968 = vmatpush.bf16.msrb.mxu2 %v3300_v3  ;;  %1937 = vmatmul.bf16.vlgmr.msra.gmra.mxu3 %v4916_v38  ;;  %v2796_v3 = vor.u32 %v4097_v59, %v2795_v58  ;;  %v3372_v9 = vor.u32 %v4241_v2, %v3371_v1  ;;  %v3852_v58 = vor.u32 %v4361_v52, %v3851_v50  ;;  %v4112_v1 = vld [vmem:[%s6436_s1 + $0xfc] sm:$0xf]  ;;  %v2869_v2 = vld [vmem:[%s6436_s1 + $0x110] sm:$0xf0]  ;;  %v3539_v50 = vld [vmem:[%s6436_s1 + $0x638] sm:$0xf] }
  0x67   :  { %1981 = vmatpush.bf16.msrb.mxu3 %v3492_v7  ;;  %v4091_v7 = vld [vmem:[%s6436_s1 + $0x4c] sm:$0xf0]  ;;  %v2896_v59 = vor.u32 %v4118_v53, %v2893_v54  ;;  %v3731_v52 = vld [vmem:[%s6436_s1 + $0x7b8] sm:$0xf] }
  0x68   :  { %1943 = vmatpush.bf16.msrb.mxu0 %v2892_v13  ;;  %v3347_v13 = vld [vmem:[%s6436_s1 + $0x4b8] sm:$0xf]  ;;  %v4331_v54 = vld [vmem:[%s6436_s1 + $0x7cc] sm:$0xf0] }
  0x69   :  { %1956 = vmatpush.bf16.msrb.mxu1 %v3084_v14  ;;  %v4235_v14 = vld [vmem:[%s6436_s1 + $0x4cc] sm:$0xf0] }
  0x6a   :  { %1969 = vmatpush.bf16.msrb.mxu2 %v3276_v15  ;;  %v2772_v15 = vor.u32 %v4091_v7, %v2771_v6  ;;  %v3348_v27 = vor.u32 %v4235_v14, %v3347_v13  ;;  %v3828_v6 = vor.u32 %v4355_v0, %v3827_v62  ;;  %v2872_v7 = vor.u32 %v4112_v1, %v2869_v2  ;;  %v4106_v13 = vld [vmem:[%s6436_s1 + $0xcc] sm:$0xf]  ;;  %v2845_v14 = vld [vmem:[%s6436_s1 + $0xe0] sm:$0xf0]  ;;  %v3707_v0 = vld [vmem:[%s6436_s1 + $0x788] sm:$0xf] }
  0x6b   :  { %1982 = vmatpush.bf16.msrb.mxu3 %v3468_v23  ;;  %v3156_v23 = vor.u32 %v4187_v12, %v3155_v11  ;;  %v4349_v12 = vld [vmem:[%s6436_s1 + $0x85c] sm:$0xf0]  ;;  %v3732_v62 = vor.u32 %v4331_v54, %v3731_v52  ;;  %v4082_v2 = vld [vmem:[%s6436_s1 + $0xc] sm:$0xf] }
  0x6c   :  { %1944 = vmatpush.bf16.msrb.mxu0 %v2868_v29  ;;  %v3323_v29 = vld [vmem:[%s6436_s1 + $0x488] sm:$0xf]  ;;  %v4325_v1 = vld [vmem:[%s6436_s1 + $0x79c] sm:$0xf0]  ;;  %v4202_v52 = vld [vmem:[%s6436_s1 + $0x3cc] sm:$0xf] }
  0x6d   :  { %1957 = vmatpush.bf16.msrb.mxu1 %v3060_v30  ;;  %v4229_v30 = vld [vmem:[%s6436_s1 + $0x49c] sm:$0xf0]  ;;  %v4250_v54 = vld [vmem:[%s6436_s1 + $0x54c] sm:$0xf] }
  0x6e   :  { %1970 = vmatpush.bf16.msrb.mxu2 %v3252_v31  ;;  %v3683_v31 = vld [vmem:[%s6436_s1 + $0x758] sm:$0xf] }
  0x6f   :  { %1983 = vmatpush.bf16.msrb.mxu3 %v3444_v36  ;;  %v4367_v36 = vld [vmem:[%s6436_s1 + $0x8ec] sm:$0xf0] }
  0x70   :  { %1945 = vmatpush.bf16.msrb.mxu0 %v2844_v43  ;;  %v3109_v43 = vld [vmem:[%s6436_s1 + $0x2f0] sm:$0xf0]  ;;  %v3876_v46 = vor.u32 %v4367_v36, %v3875_v33  ;;  %v3588_v33 = vor.u32 %v4295_v25, %v3587_v24 }
  0x71   :  { %1958 = vmatpush.bf16.msrb.mxu1 %v3036_v44  ;;  %v3324_v44 = vor.u32 %v4229_v30, %v3323_v29  ;;  %v3112_v51 = vor.u32 %v4172_v42, %v3109_v43  ;;  %v4100_v29 = vld [vmem:[%s6436_s1 + $0x9c] sm:$0xf]  ;;  %v2821_v30 = vld [vmem:[%s6436_s1 + $0xb0] sm:$0xf0]  ;;  %v4337_v42 = vld [vmem:[%s6436_s1 + $0x7fc] sm:$0xf0] }
  0x72   :  { %1971 = vmatpush.bf16.msrb.mxu2 %v3228_v45  ;;  %v3684_v45 = vor.u32 %v4319_v32, %v3683_v31  ;;  %v4148_v31 = vld [vmem:[%s6436_s1 + $0x21c] sm:$0xf]  ;;  %v3013_v32 = vld [vmem:[%s6436_s1 + $0x230] sm:$0xf0]  ;;  %v2824_v36 = vor.u32 %v4100_v29, %v2821_v30  ;;  %v4094_v43 = vld [vmem:[%s6436_s1 + $0x6c] sm:$0xf] }
  0x73   :  { %1984 = vmatpush.bf16.msrb.mxu3 %v3420_v49  ;;  %v4313_v49 = vld [vmem:[%s6436_s1 + $0x73c] sm:$0xf0]  ;;  %v3469_v30 = vld [vmem:[%s6436_s1 + $0x5c0] sm:$0xf0] }
  0x74   :  { %1946 = vmatpush.bf16.msrb.mxu0 %v2820_v55  ;;  %v4166_v55 = vld [vmem:[%s6436_s1 + $0x2ac] sm:$0xf] }
  0x75   :  { %1959 = vmatpush.bf16.msrb.mxu1 %v3012_v56  ;;  %v3085_v56 = vld [vmem:[%s6436_s1 + $0x2c0] sm:$0xf0] }
  0x76   :  { %1972 = vmatpush.bf16.msrb.mxu2 %v3204_v57  ;;  %v3660_v57 = vor.u32 %v4313_v49, %v3659_v48  ;;  %v3088_v63 = vor.u32 %v4166_v55, %v3085_v56  ;;  %v4088_v55 = vld [vmem:[%s6436_s1 + $0x3c] sm:$0xf]  ;;  %v2773_v56 = vld [vmem:[%s6436_s1 + $0x50] sm:$0xf0] }
  0x77   :  { %1985 = vmatpush.bf16.msrb.mxu3 %v3396_v61  ;;  %v4307_v61 = vld [vmem:[%s6436_s1 + $0x70c] sm:$0xf0] }
  0x78   :  { %1947 = vmatpush.bf16.msrb.mxu0 %v2796_v3  ;;  %v4160_v3 = vld [vmem:[%s6436_s1 + $0x27c] sm:$0xf] }
  0x79   :  { %1960 = vmatpush.bf16.msrb.mxu1 %v2988_v4  ;;  %v3061_v4 = vld [vmem:[%s6436_s1 + $0x290] sm:$0xf0] }
  0x7a   :  { %1973 = vmatpush.bf16.msrb.mxu2 %v3180_v5  ;;  %v3636_v5 = vor.u32 %v4307_v61, %v3635_v60  ;;  %v3064_v11 = vor.u32 %v4160_v3, %v3061_v4  ;;  %v3515_v60 = vld [vmem:[%s6436_s1 + $0x608] sm:$0xf]  ;;  %v4277_v61 = vld [vmem:[%s6436_s1 + $0x61c] sm:$0xf0]  ;;  %v2749_v4 = vld [vmem:[%s6436_s1 + $0x20] sm:$0xf0] }
  0x7b   :  { %1986 = vmatpush.bf16.msrb.mxu3 %v3372_v9  ;;  %v4301_v9 = vld [vmem:[%s6436_s1 + $0x6dc] sm:$0xf0] }
  0x7c   :  { %1948 = vmatpush.bf16.msrb.mxu0 %v2772_v15  ;;  %v4154_v15 = vld [vmem:[%s6436_s1 + $0x24c] sm:$0xf]  ;;  %v3612_v17 = vor.u32 %v4301_v9, %v3611_v8  ;;  %v3301_v8 = vld [vmem:[%s6436_s1 + $0x470] sm:$0xf0]  ;;  %v4268_v9 = vld [vmem:[%s6436_s1 + $0x5dc] sm:$0xf] }
  0x7d   :  { %1961 = vmatpush.bf16.msrb.mxu1 %v2964_v21  ;;  %v3804_v21 = vor.u32 %v4349_v12, %v3803_v10  ;;  %v3516_v10 = vor.u32 %v4277_v61, %v3515_v60  ;;  %v4316_v12 = vld [vmem:[%s6436_s1 + $0x75c] sm:$0xf]  ;;  %v3805_v60 = vld [vmem:[%s6436_s1 + $0x860] sm:$0xf0] }
  0x7e   :  { %1974 = vmatpush.bf16.msrb.mxu2 %v3156_v23  ;;  %v2848_v23 = vor.u32 %v4106_v13, %v2845_v14  ;;  %v3685_v13 = vld [vmem:[%s6436_s1 + $0x770] sm:$0xf0]  ;;  %v3708_v14 = vor.u32 %v4325_v1, %v3707_v0 }
  0x7f   :  { %1987 = vmatpush.bf16.msrb.mxu3 %v3348_v27  ;;  %v3040_v27 = vor.u32 %v4154_v15, %v3037_v16  ;;  %v2752_v15 = vor.u32 %v4082_v2, %v2749_v4  ;;  %v4364_v16 = vld [vmem:[%s6436_s1 + $0x8dc] sm:$0xf]  ;;  %v3688_v25 = vor.u32 %v4316_v12, %v3685_v13  ;;  %v3205_v1 = vld [vmem:[%s6436_s1 + $0x3b0] sm:$0xf0] }
  0x80   :  { %1949 = vmatpush.bf16.msrb.mxu0 %v2748_v34  ;;  %v3780_v34 = vor.u32 %v4343_v28, %v3779_v26  ;;  %v4214_v26 = vld [vmem:[%s6436_s1 + $0x42c] sm:$0xf]  ;;  %v4244_v2 = vld [vmem:[%s6436_s1 + $0x51c] sm:$0xf] }
  0x81   :  { %1962 = vmatpush.bf16.msrb.mxu1 %v2940_v40  ;;  %v3755_v40 = vld [vmem:[%s6436_s1 + $0x7e8] sm:$0xf]  ;;  %v4262_v28 = vld [vmem:[%s6436_s1 + $0x5ac] sm:$0xf] }
  0x82   :  { %1975 = vmatpush.bf16.msrb.mxu2 %v3132_v41  ;;  %v3016_v41 = vor.u32 %v4148_v31, %v3013_v32  ;;  %v3756_v48 = vor.u32 %v4337_v42, %v3755_v40  ;;  %v4310_v31 = vld [vmem:[%s6436_s1 + $0x72c] sm:$0xf]  ;;  %v3661_v32 = vld [vmem:[%s6436_s1 + $0x740] sm:$0xf0]  ;;  %v4208_v40 = vld [vmem:[%s6436_s1 + $0x3fc] sm:$0xf] }
  0x83   :  { %1988 = vmatpush.bf16.msrb.mxu3 %v3324_v44  ;;  %1950 = vmatmul.bf16.vlgmr.msrb.gmra.mxu0 %v4757_v19  ;;  %v2797_v44 = vld [vmem:[%s6436_s1 + $0x80] sm:$0xf0]  ;;  %v4256_v42 = vld [vmem:[%s6436_s1 + $0x57c] sm:$0xf] }
  0x84   :  { %1994 = vmatpush.bf16.msra.mxu0 %v3684_v45  ;;  %1963 = vmatmul.bf16.vlgmr.msrb.gmra.mxu1 %v4761_v22  ;;  %v4142_v45 = vld [vmem:[%s6436_s1 + $0x1ec] sm:$0xf]  ;;  %v2800_v49 = vor.u32 %v4094_v43, %v2797_v44  ;;  %v3445_v44 = vld [vmem:[%s6436_s1 + $0x590] sm:$0xf0] }
  0x85   :  { %2007 = vmatpush.bf16.msra.mxu1 %v3876_v46  ;;  %1976 = vmatmul.bf16.vlgmr.msrb.gmra.mxu2 %v4755_v18  ;;  %v2989_v46 = vld [vmem:[%s6436_s1 + $0x200] sm:$0xf0] }
  0x86   :  { %2020 = vmatpush.bf16.msra.mxu2 %v2920_v47  ;;  %1989 = vmatmul.bf16.vlgmr.msrb.gmra.mxu3 %v4759_v20  ;;  %v3564_v47 = vor.u32 %v4289_v39, %v3563_v37  ;;  %v2992_v53 = vor.u32 %v4142_v45, %v2989_v46  ;;  %v3472_v37 = vor.u32 %v4262_v28, %v3469_v30  ;;  %v4304_v45 = vld [vmem:[%s6436_s1 + $0x6fc] sm:$0xf]  ;;  %v3637_v46 = vld [vmem:[%s6436_s1 + $0x710] sm:$0xf0] }
  0x87   :  { %2033 = vmatpush.bf16.msra.mxu3 %v3112_v51  ;;  %v4283_v51 = vld [vmem:[%s6436_s1 + $0x64c] sm:$0xf0]  ;;  %v3664_v39 = vor.u32 %v4310_v31, %v3661_v32  ;;  %v4184_v31 = vld [vmem:[%s6436_s1 + $0x33c] sm:$0xf]  ;;  %v3157_v32 = vld [vmem:[%s6436_s1 + $0x350] sm:$0xf0] }
  0x88   :  { %1995 = vmatpush.bf16.msra.mxu0 %v3660_v57  ;;  %v4136_v57 = vld [vmem:[%s6436_s1 + $0x1bc] sm:$0xf] }
  0x89   :  { %2008 = vmatpush.bf16.msra.mxu1 %v3852_v58  ;;  %v2965_v58 = vld [vmem:[%s6436_s1 + $0x1d0] sm:$0xf0] }
  0x8a   :  { %2021 = vmatpush.bf16.msra.mxu2 %v2896_v59  ;;  %v3540_v59 = vor.u32 %v4283_v51, %v3539_v50  ;;  %v2968_v3 = vor.u32 %v4136_v57, %v2965_v58  ;;  %v3448_v50 = vor.u32 %v4256_v42, %v3445_v44  ;;  %v3640_v51 = vor.u32 %v4304_v45, %v3637_v46  ;;  %v4298_v57 = vld [vmem:[%s6436_s1 + $0x6cc] sm:$0xf]  ;;  %v3613_v58 = vld [vmem:[%s6436_s1 + $0x6e0] sm:$0xf0]  ;;  %v4328_v42 = vld [vmem:[%s6436_s1 + $0x7bc] sm:$0xf] }
  0x8b   :  { %2034 = vmatpush.bf16.msra.mxu3 %v3088_v63  ;;  %v2776_v63 = vor.u32 %v4088_v55, %v2773_v56  ;;  %v3421_v56 = vld [vmem:[%s6436_s1 + $0x560] sm:$0xf0]  ;;  %v3616_v0 = vor.u32 %v4298_v57, %v3613_v58  ;;  %v3160_v45 = vor.u32 %v4184_v31, %v3157_v32  ;;  %v4178_v46 = vld [vmem:[%s6436_s1 + $0x30c] sm:$0xf] }
  0x8c   :  { %1996 = vmatpush.bf16.msra.mxu0 %v3636_v5  ;;  %v4130_v5 = vld [vmem:[%s6436_s1 + $0x18c] sm:$0xf]  ;;  %v3709_v57 = vld [vmem:[%s6436_s1 + $0x7a0] sm:$0xf0] }
  0x8d   :  { %2009 = vmatpush.bf16.msra.mxu1 %v3828_v6  ;;  %v2941_v6 = vld [vmem:[%s6436_s1 + $0x1a0] sm:$0xf0] }
  0x8e   :  { %2022 = vmatpush.bf16.msra.mxu2 %v2872_v7  ;;  %v4220_v7 = vld [vmem:[%s6436_s1 + $0x45c] sm:$0xf] }
  0x8f   :  { %2035 = vmatpush.bf16.msra.mxu3 %v3064_v11  ;;  %v3493_v11 = vld [vmem:[%s6436_s1 + $0x5f0] sm:$0xf0] }
  0x90   :  { %1997 = vmatpush.bf16.msra.mxu0 %v3612_v17  ;;  %v3877_v17 = vld [vmem:[%s6436_s1 + $0x8f0] sm:$0xf0]  ;;  %v3496_v24 = vor.u32 %v4268_v9, %v3493_v11  ;;  %v4190_v11 = vld [vmem:[%s6436_s1 + $0x36c] sm:$0xf] }
  0x91   :  { %2010 = vmatpush.bf16.msra.mxu1 %v3804_v21  ;;  %v2944_v21 = vor.u32 %v4130_v5, %v2941_v6  ;;  %v3880_v29 = vor.u32 %v4364_v16, %v3877_v17  ;;  %v4292_v5 = vld [vmem:[%s6436_s1 + $0x69c] sm:$0xf]  ;;  %v3589_v6 = vld [vmem:[%s6436_s1 + $0x6b0] sm:$0xf0] }
  0x92   :  { %2023 = vmatpush.bf16.msra.mxu2 %v2848_v23  ;;  %v3304_v23 = vor.u32 %v4220_v7, %v3301_v8  ;;  %v5579_v7 = vld [vmem:[%s6438_s2] sm:$0x3f]  ;;  %v4340_v8 = vld [vmem:[%s6436_s1 + $0x81c] sm:$0xf]  ;;  %v3781_v9 = vld [vmem:[%s6436_s1 + $0x830] sm:$0xf0]  ;;  %v3592_v13 = vor.u32 %v4292_v5, %v3589_v6 }
  0x93   :  { %2036 = vmatpush.bf16.msra.mxu3 %v3040_v27  ;;  %v3277_v27 = vld [vmem:[%s6436_s1 + $0x440] sm:$0xf0]  ;;  %v313_v16 = vperm.slane %v5579_v7, 0  ;;  %v3784_v17 = vor.u32 %v4340_v8, %v3781_v9  ;;  %v3499_v8 = vld [vmem:[%s6436_s1 + $0x5e0] sm:$0xf] }
  0x94   :  { %1998 = vmatpush.bf16.msra.mxu0 %v3588_v33  ;;  %v4358_v33 = vld [vmem:[%s6436_s1 + $0x8ac] sm:$0xf]  ;;  %v4272_v9 = vld [vmem:[%s6436_s1 + $0x5f4] sm:$0xf0] }
  0x95   :  { %2011 = vmatpush.bf16.msra.mxu1 %v3780_v34  ;;  %v3853_v34 = vld [vmem:[%s6436_s1 + $0x8c0] sm:$0xf0] }
  0x96   :  { %2024 = vmatpush.bf16.msra.mxu2 %v2824_v36  ;;  %v3280_v36 = vor.u32 %v4214_v26, %v3277_v27  ;;  %v3856_v43 = vor.u32 %v4358_v33, %v3853_v34  ;;  %v3757_v26 = vld [vmem:[%s6436_s1 + $0x800] sm:$0xf0]  ;;  %v4232_v33 = vld [vmem:[%s6436_s1 + $0x4bc] sm:$0xf] }
  0x97   :  { %2037 = vmatpush.bf16.msra.mxu3 %v3016_v41  ;;  %v3253_v41 = vld [vmem:[%s6436_s1 + $0x410] sm:$0xf0] }
  0x98   :  { %1999 = vmatpush.bf16.msra.mxu0 %v3564_v47  ;;  %v4352_v47 = vld [vmem:[%s6436_s1 + $0x87c] sm:$0xf] }
  0x99   :  { %2012 = vmatpush.bf16.msra.mxu1 %v3756_v48  ;;  %v3829_v48 = vld [vmem:[%s6436_s1 + $0x890] sm:$0xf0] }
  0x9a   :  { %2025 = vmatpush.bf16.msra.mxu2 %v2800_v49  ;;  %v3256_v49 = vor.u32 %v4208_v40, %v3253_v41  ;;  %v3832_v55 = vor.u32 %v4352_v47, %v3829_v48  ;;  %v4280_v40 = vld [vmem:[%s6436_s1 + $0x63c] sm:$0xf]  ;;  %v3541_v41 = vld [vmem:[%s6436_s1 + $0x650] sm:$0xf0]  ;;  %v3133_v47 = vld [vmem:[%s6436_s1 + $0x320] sm:$0xf0] }
  0x9b   :  { %2038 = vmatpush.bf16.msra.mxu3 %v2992_v53  ;;  %v3229_v53 = vld [vmem:[%s6436_s1 + $0x3e0] sm:$0xf0] }
  0x9c   :  { %2000 = vmatpush.bf16.msra.mxu0 %v3540_v59  ;;  %v4346_v59 = vld [vmem:[%s6436_s1 + $0x84c] sm:$0xf]  ;;  %v3232_v61 = vor.u32 %v4202_v52, %v3229_v53 }
  0x9d   :  { %2013 = vmatpush.bf16.msra.mxu1 %v3732_v62  ;;  %v4196_v62 = vld [vmem:[%s6436_s1 + $0x39c] sm:$0xf]  ;;  %v3808_v4 = vor.u32 %v4346_v59, %v3805_v60  ;;  %v4274_v52 = vld [vmem:[%s6436_s1 + $0x60c] sm:$0xf]  ;;  %v2923_v60 = vld [vmem:[%s6436_s1 + $0x160] sm:$0xf] }
  0x9e   :  { %2026 = vmatpush.bf16.msra.mxu2 %v2776_v63  ;;  %v3424_v63 = vor.u32 %v4250_v54, %v3421_v56  ;;  %v4322_v56 = vld [vmem:[%s6436_s1 + $0x78c] sm:$0xf] }
  0x9f   :  { %2039 = vmatpush.bf16.msra.mxu3 %v2968_v3  ;;  %v3397_v3 = vld [vmem:[%s6436_s1 + $0x530] sm:$0xf0] }
  0xa0   :  { %2001 = vmatpush.bf16.msra.mxu0 %v3516_v10  ;;  %v3208_v10 = vor.u32 %v4196_v62, %v3205_v1  ;;  %v3400_v12 = vor.u32 %v4244_v2, %v3397_v3  ;;  %v1795_v28 = vpop.f32.mrf.mxu0  ;;  %v3115_v62 = vld [vmem:[%s6436_s1 + $0x2e0] sm:$0xf]  ;;  %v4224_v2 = vld [vmem:[%s6436_s1 + $0x474] sm:$0xf0] }
  0xa1   :  { %2014 = vmatpush.bf16.msra.mxu1 %v3708_v14  ;;  %v3181_v14 = vld [vmem:[%s6436_s1 + $0x380] sm:$0xf0]  ;;  %v1796_v34 = vadd.f32 %v1795_v28, %v313_v16  ;;  %v3307_v1 = vld [vmem:[%s6436_s1 + $0x460] sm:$0xf]  ;;  %v4122_v16 = vld [vmem:[%s6436_s1 + $0x144] sm:$0xf0] }
  0xa2   :  { %2027 = vmatpush.bf16.msra.mxu2 %v2752_v15  ;;  %v4238_v15 = vld [vmem:[%s6436_s1 + $0x4ec] sm:$0xf]  ;;  %v3184_v27 = vor.u32 %v4190_v11, %v3181_v14  ;;  %v3712_v11 = vor.u32 %v4322_v56, %v3709_v57  ;;  %v3308_v14 = vor.u32 %v4224_v2, %v3307_v1  ;;  %v4152_v2 = vld [vmem:[%s6436_s1 + $0x234] sm:$0xf0] }
  0xa3   :  { %2040 = vmatpush.bf16.msra.mxu3 %v2944_v21  ;;  %2002 = vmatmul.bf16.vlgmr.msra.gmra.mxu0 %v4908_v35  ;;  %v3373_v21 = vld [vmem:[%s6436_s1 + $0x500] sm:$0xf0] }
  0xa4   :  { %2046 = vmatpush.bf16.msrb.mxu0 %v3304_v23  ;;  %2015 = vmatmul.bf16.vlgmr.msra.gmra.mxu1 %v4916_v38  ;;  %v4286_v23 = vld [vmem:[%s6436_s1 + $0x66c] sm:$0xf] }
  0xa5   :  { %2059 = vmatpush.bf16.msrb.mxu1 %v3496_v24  ;;  %2028 = vmatmul.bf16.vlgmr.msra.gmra.mxu2 %v4757_v19  ;;  %v3565_v24 = vld [vmem:[%s6436_s1 + $0x680] sm:$0xf0] }
  0xa6   :  { %2072 = vmatpush.bf16.msrb.mxu2 %v3688_v25  ;;  %2041 = vmatmul.bf16.vlgmr.msra.gmra.mxu3 %v4761_v22  ;;  %v4334_v25 = vld [vmem:[%s6436_s1 + $0x7ec] sm:$0xf]  ;;  %v3568_v30 = vor.u32 %v4286_v23, %v3565_v24  ;;  %v4170_v23 = vld [vmem:[%s6436_s1 + $0x2c4] sm:$0xf0]  ;;  %v3283_v24 = vld [vmem:[%s6436_s1 + $0x430] sm:$0xf] }
  0xa7   :  { %2085 = vmatpush.bf16.msrb.mxu3 %v3880_v29  ;;  %v3376_v29 = vor.u32 %v4238_v15, %v3373_v21  ;;  %v2899_v15 = vld [vmem:[%s6436_s1 + $0x130] sm:$0xf]  ;;  %v3500_v21 = vor.u32 %v4272_v9, %v3499_v8  ;;  %v4248_v8 = vld [vmem:[%s6436_s1 + $0x534] sm:$0xf0]  ;;  %v314_v9 = vperm.slane %v5579_v7, 1 }
  0xa8   :  { %2047 = vmatpush.bf16.msrb.mxu0 %v3280_v36  ;;  %v1808_v36 = vpop.f32.mrf.mxu1  ;;  %v1821_v53 = vpop.f32.mrf.mxu2 }
  0xa9   :  { %2060 = vmatpush.bf16.msrb.mxu1 %v3472_v37  ;;  %v3760_v37 = vor.u32 %v4334_v25, %v3757_v26  ;;  %v1809_v44 = vadd.f32 %v1808_v36, %v1796_v34  ;;  %v1834_v59 = vpop.f32.mrf.mxu3  ;;  %v4218_v25 = vld [vmem:[%s6436_s1 + $0x444] sm:$0xf0]  ;;  %v3475_v26 = vld [vmem:[%s6436_s1 + $0x5b0] sm:$0xf]  ;;  %v4116_v34 = vld [vmem:[%s6436_s1 + $0x114] sm:$0xf0] }
  0xaa   :  { %2073 = vmatpush.bf16.msrb.mxu2 %v3664_v39  ;;  %v3349_v39 = vld [vmem:[%s6436_s1 + $0x4d0] sm:$0xf0]  ;;  %v3284_v32 = vor.u32 %v4218_v25, %v3283_v24  ;;  %v3067_v36 = vld [vmem:[%s6436_s1 + $0x280] sm:$0xf]  ;;  %v3379_v25 = vld [vmem:[%s6436_s1 + $0x4f0] sm:$0xf] }
  0xab   :  { %2086 = vmatpush.bf16.msrb.mxu3 %v3856_v43  ;;  %v3733_v43 = vld [vmem:[%s6436_s1 + $0x7d0] sm:$0xf0]  ;;  %v3352_v48 = vor.u32 %v4232_v33, %v3349_v39  ;;  %v1822_v58 = vadd.f32 %v1821_v53, %v1809_v44  ;;  %v2875_v33 = vld [vmem:[%s6436_s1 + $0x100] sm:$0xf]  ;;  %v4164_v39 = vld [vmem:[%s6436_s1 + $0x294] sm:$0xf0] }
  0xac   :  { %2048 = vmatpush.bf16.msrb.mxu0 %v3256_v49  ;;  %v3544_v49 = vor.u32 %v4280_v40, %v3541_v41  ;;  %v3736_v54 = vor.u32 %v4328_v42, %v3733_v43  ;;  %v3259_v40 = vld [vmem:[%s6436_s1 + $0x400] sm:$0xf]  ;;  %v4212_v41 = vld [vmem:[%s6436_s1 + $0x414] sm:$0xf0]  ;;  %v2876_v44 = vor.u32 %v4116_v34, %v2875_v33  ;;  %v4206_v53 = vld [vmem:[%s6436_s1 + $0x3e4] sm:$0xf0] }
  0xad   :  { %2061 = vmatpush.bf16.msrb.mxu1 %v3448_v50  ;;  %v4226_v50 = vld [vmem:[%s6436_s1 + $0x48c] sm:$0xf]  ;;  %v5678_v3 = vadd.f32 %v1834_v59, %v1822_v58  ;;  %v3451_v42 = vld [vmem:[%s6436_s1 + $0x580] sm:$0xf]  ;;  %v4260_v43 = vld [vmem:[%s6436_s1 + $0x594] sm:$0xf0] }
  0xae   :  { %2074 = vmatpush.bf16.msrb.mxu2 %v3640_v51  ;;  %v3325_v51 = vld [vmem:[%s6436_s1 + $0x4a0] sm:$0xf0]  ;;  %v2779_v34 = vld [vmem:[%s6436_s1 + $0x40] sm:$0xf] }
  0xaf   :  { %2087 = vmatpush.bf16.msrb.mxu3 %v3832_v55  ;;  %v3517_v55 = vld [vmem:[%s6436_s1 + $0x620] sm:$0xf0]  ;;  %v3328_v5 = vor.u32 %v4226_v50, %v3325_v51  ;;  %v3452_v50 = vor.u32 %v4260_v43, %v3451_v42  ;;  %v4158_v51 = vld [vmem:[%s6436_s1 + $0x264] sm:$0xf0]  ;;  %v3163_v42 = vld [vmem:[%s6436_s1 + $0x340] sm:$0xf] }
  0xb0   :  { %2049 = vmatpush.bf16.msrb.mxu0 %v3232_v61  ;;  %v4128_v61 = vld [vmem:[%s6436_s1 + $0x174] sm:$0xf0]  ;;  %v3520_v6 = vor.u32 %v4274_v52, %v3517_v55  ;;  %v1823_v28 = vpop.f32.mrf.mxu2  ;;  %v3235_v52 = vld [vmem:[%s6436_s1 + $0x3d0] sm:$0xf]  ;;  %v4254_v55 = vld [vmem:[%s6436_s1 + $0x564] sm:$0xf0] }
  0xb1   :  { %2062 = vmatpush.bf16.msrb.mxu1 %v3424_v63  ;;  %v3136_v63 = vor.u32 %v4178_v46, %v3133_v47  ;;  %v3260_v46 = vor.u32 %v4212_v41, %v3259_v40  ;;  %v2851_v47 = vld [vmem:[%s6436_s1 + $0xd0] sm:$0xf]  ;;  %v4140_v41 = vld [vmem:[%s6436_s1 + $0x1d4] sm:$0xf0] }
  0xb2   :  { %2075 = vmatpush.bf16.msrb.mxu2 %v3616_v0  ;;  %v4176_v0 = vld [vmem:[%s6436_s1 + $0x2f4] sm:$0xf0] }
  0xb3   :  { %2088 = vmatpush.bf16.msrb.mxu3 %v3808_v4  ;;  %v1797_v4 = vpop.f32.mrf.mxu0  ;;  %v4188_v43 = vld [vmem:[%s6436_s1 + $0x354] sm:$0xf0] }
  0xb4   :  { %2050 = vmatpush.bf16.msrb.mxu0 %v3208_v10  ;;  %v1810_v10 = vpop.f32.mrf.mxu1  ;;  %v4200_v4 = vld [vmem:[%s6436_s1 + $0x3b4] sm:$0xf0] }
  0xb5   :  { %2063 = vmatpush.bf16.msrb.mxu1 %v3400_v12  ;;  %v2924_v12 = vor.u32 %v4128_v61, %v2923_v60  ;;  %v3236_v61 = vor.u32 %v4206_v53, %v3235_v52  ;;  %v4134_v52 = vld [vmem:[%s6436_s1 + $0x1a4] sm:$0xf0]  ;;  %v3139_v53 = vld [vmem:[%s6436_s1 + $0x310] sm:$0xf] }
  0xb6   :  { %2076 = vmatpush.bf16.msrb.mxu2 %v3592_v13  ;;  %v3116_v13 = vor.u32 %v4176_v0, %v3115_v62  ;;  %v2827_v62 = vld [vmem:[%s6436_s1 + $0xa0] sm:$0xf] }
  0xb7   :  { %2089 = vmatpush.bf16.msrb.mxu3 %v3784_v17  ;;  %v3091_v17 = vld [vmem:[%s6436_s1 + $0x2b0] sm:$0xf]  ;;  %v3019_v0 = vld [vmem:[%s6436_s1 + $0x220] sm:$0xf] }
  0xb8   :  { %2051 = vmatpush.bf16.msrb.mxu0 %v3184_v27  ;;  %v4266_v27 = vld [vmem:[%s6436_s1 + $0x5c4] sm:$0xf0]  ;;  %v3092_v31 = vor.u32 %v4170_v23, %v3091_v17 }
  0xb9   :  { %2064 = vmatpush.bf16.msrb.mxu1 %v3376_v29  ;;  %v2900_v29 = vor.u32 %v4122_v16, %v2899_v15  ;;  %v2995_v15 = vld [vmem:[%s6436_s1 + $0x1f0] sm:$0xf]  ;;  %v4146_v17 = vld [vmem:[%s6436_s1 + $0x204] sm:$0xf0] }
  0xba   :  { %2077 = vmatpush.bf16.msrb.mxu2 %v3568_v30  ;;  %v1836_v30 = vpop.f32.mrf.mxu3  ;;  %v4194_v23 = vld [vmem:[%s6436_s1 + $0x384] sm:$0xf0] }
  0xbb   :  { %2090 = vmatpush.bf16.msrb.mxu3 %v3760_v37  ;;  %v3476_v37 = vor.u32 %v4266_v27, %v3475_v26  ;;  %v4242_v26 = vld [vmem:[%s6436_s1 + $0x504] sm:$0xf0] }
  0xbc   :  { %2052 = vmatpush.bf16.msrb.mxu0 %v3160_v45  ;;  %v3068_v45 = vor.u32 %v4164_v39, %v3067_v36  ;;  %v4092_v36 = vld [vmem:[%s6436_s1 + $0x54] sm:$0xf0]  ;;  %v3380_v40 = vor.u32 %v4242_v26, %v3379_v25  ;;  %v3093_v25 = vld [vmem:[%s6436_s1 + $0x2c8] sm:$0xf0] }
  0xbd   :  { %2065 = vmatpush.bf16.msrb.mxu1 %v3352_v48  ;;  %v4110_v48 = vld [vmem:[%s6436_s1 + $0xe4] sm:$0xf0] }
  0xbe   :  { %2078 = vmatpush.bf16.msrb.mxu2 %v3544_v49  ;;  %v3043_v49 = vld [vmem:[%s6436_s1 + $0x250] sm:$0xf]  ;;  %v2852_v57 = vor.u32 %v4110_v48, %v2851_v47  ;;  %v4086_v48 = vld [vmem:[%s6436_s1 + $0x24] sm:$0xf0] }
  0xbf   :  { %2091 = vmatpush.bf16.msrb.mxu3 %v3736_v54  ;;  %v3427_v54 = vld [vmem:[%s6436_s1 + $0x550] sm:$0xf]  ;;  %v3044_v60 = vor.u32 %v4158_v51, %v3043_v49 }
  0xc0   :  { %2053 = vmatpush.bf16.msrb.mxu0 %v3136_v63  ;;  %v1847_v56 = vpop.f32.mrf.mxu0  ;;  %v4104_v63 = vld [vmem:[%s6436_s1 + $0xb4] sm:$0xf0]  ;;  %v3428_v1 = vor.u32 %v4254_v55, %v3427_v54  ;;  %v2755_v47 = vld [vmem:[%s6436_s1 + $0x10] sm:$0xf]  ;;  %v4182_v55 = vld [vmem:[%s6436_s1 + $0x324] sm:$0xf0] }
  0xc1   :  { %2066 = vmatpush.bf16.msrb.mxu1 %v3328_v5  ;;  %v1848_v58 = vadd.f32 %v1847_v56, %v5678_v3  ;;  %v1860_v59 = vpop.f32.mrf.mxu1  ;;  %v3211_v3 = vld [vmem:[%s6436_s1 + $0x3a0] sm:$0xf]  ;;  %v2828_v10 = vor.u32 %v4104_v63, %v2827_v62  ;;  %v2947_v51 = vld [vmem:[%s6436_s1 + $0x190] sm:$0xf]  ;;  %v2756_v63 = vor.u32 %v4086_v48, %v2755_v47  ;;  %v4350_v48 = vld [vmem:[%s6436_s1 + $0x864] sm:$0xf0] }
  0xc2   :  { %2079 = vmatpush.bf16.msrb.mxu2 %v3520_v6  ;;  %v3403_v6 = vld [vmem:[%s6436_s1 + $0x520] sm:$0xf]  ;;  %v3331_v56 = vld [vmem:[%s6436_s1 + $0x490] sm:$0xf] }
  0xc3   :  { %2092 = vmatpush.bf16.msrb.mxu3 %v3712_v11  ;;  %2054 = vmatmul.bf16.vlgmr.msrb.gmra.mxu0 %v4755_v18  ;;  %v5781_v5 = vadd.f32 %v1860_v59, %v1848_v58  ;;  %v3020_v11 = vor.u32 %v4152_v2, %v3019_v0  ;;  %v3404_v16 = vor.u32 %v4248_v8, %v3403_v6  ;;  %v3691_v59 = vld [vmem:[%s6436_s1 + $0x760] sm:$0xf]  ;;  %v4368_v0 = vld [vmem:[%s6436_s1 + $0x8f4] sm:$0xf0]  ;;  %v2925_v2 = vld [vmem:[%s6436_s1 + $0x178] sm:$0xf0] }
  0xc4   :  { %2098 = vmatpush.bf16.msra.mxu0 %v2924_v12  ;;  %2067 = vmatmul.bf16.vlgmr.msrb.gmra.mxu1 %v4759_v20  ;;  %v3212_v12 = vor.u32 %v4200_v4, %v3211_v3  ;;  %v2948_v3 = vor.u32 %v4134_v52, %v2947_v51  ;;  %v3140_v4 = vor.u32 %v4182_v55, %v3139_v53  ;;  %v4173_v6 = vld [vmem:[%s6436_s1 + $0x2e4] sm:$0xf]  ;;  %v3117_v8 = vld [vmem:[%s6436_s1 + $0x2f8] sm:$0xf0]  ;;  %v4155_v51 = vld [vmem:[%s6436_s1 + $0x254] sm:$0xf] }
  0xc5   :  { %2111 = vmatpush.bf16.msra.mxu1 %v3116_v13  ;;  %2080 = vmatmul.bf16.vlgmr.msrb.gmra.mxu2 %v4908_v35  ;;  %v2803_v13 = vld [vmem:[%s6436_s1 + $0x70] sm:$0xf]  ;;  %v3045_v52 = vld [vmem:[%s6436_s1 + $0x268] sm:$0xf0] }
  0xc6   :  { %2124 = vmatpush.bf16.msra.mxu2 %v3308_v14  ;;  %2093 = vmatmul.bf16.vlgmr.msrb.gmra.mxu3 %v4916_v38  ;;  %v4098_v14 = vld [vmem:[%s6436_s1 + $0x84] sm:$0xf0] }
  0xc7   :  { %2137 = vmatpush.bf16.msra.mxu3 %v3500_v21  ;;  %v3187_v21 = vld [vmem:[%s6436_s1 + $0x370] sm:$0xf]  ;;  %v2804_v30 = vor.u32 %v4098_v14, %v2803_v13  ;;  %v4314_v14 = vld [vmem:[%s6436_s1 + $0x744] sm:$0xf0] }
  0xc8   :  { %2099 = vmatpush.bf16.msra.mxu0 %v2900_v29  ;;  %v1873_v24 = vpop.f32.mrf.mxu2  ;;  %v1849_v29 = vpop.f32.mrf.mxu0  ;;  %v3188_v33 = vor.u32 %v4194_v23, %v3187_v21  ;;  %v3667_v13 = vld [vmem:[%s6436_s1 + $0x730] sm:$0xf]  ;;  %v4119_v21 = vld [vmem:[%s6436_s1 + $0x134] sm:$0xf]  ;;  %v2901_v23 = vld [vmem:[%s6436_s1 + $0x148] sm:$0xf0] }
  0xc9   :  { %2112 = vmatpush.bf16.msra.mxu1 %v3092_v31  ;;  %v1874_v27 = vadd.f32 %v1873_v24, %v314_v9  ;;  %v1886_v28 = vpop.f32.mrf.mxu3  ;;  %v1862_v31 = vpop.f32.mrf.mxu1  ;;  %v4167_v24 = vld [vmem:[%s6436_s1 + $0x2b4] sm:$0xf]  ;;  %v3668_v26 = vor.u32 %v4314_v14, %v3667_v13  ;;  %v3643_v29 = vld [vmem:[%s6436_s1 + $0x700] sm:$0xf]  ;;  %v4338_v14 = vld [vmem:[%s6436_s1 + $0x804] sm:$0xf0] }
  0xca   :  { %2125 = vmatpush.bf16.msra.mxu2 %v3284_v32  ;;  %v2996_v32 = vor.u32 %v4146_v17, %v2995_v15  ;;  %v3859_v15 = vld [vmem:[%s6436_s1 + $0x8b0] sm:$0xf]  ;;  %v4362_v17 = vld [vmem:[%s6436_s1 + $0x8c4] sm:$0xf0]  ;;  %v3835_v31 = vld [vmem:[%s6436_s1 + $0x880] sm:$0xf] }
  0xcb   :  { %2138 = vmatpush.bf16.msra.mxu3 %v3476_v37  ;;  %v2971_v37 = vld [vmem:[%s6436_s1 + $0x1c0] sm:$0xf]  ;;  %v5823_v39 = vadd.f32 %v1886_v28, %v1874_v27  ;;  %v3860_v27 = vor.u32 %v4362_v17, %v3859_v15  ;;  %v2904_v28 = vor.u32 %v4119_v21, %v2901_v23  ;;  %v4095_v15 = vld [vmem:[%s6436_s1 + $0x74] sm:$0xf] }
  0xcc   :  { %2100 = vmatpush.bf16.msra.mxu0 %v2876_v44  ;;  %v3355_v44 = vld [vmem:[%s6436_s1 + $0x4c0] sm:$0xf]  ;;  %v2972_v49 = vor.u32 %v4140_v41, %v2971_v37  ;;  %v4161_v37 = vld [vmem:[%s6436_s1 + $0x284] sm:$0xf]  ;;  %v4143_v23 = vld [vmem:[%s6436_s1 + $0x1f4] sm:$0xf] }
  0xcd   :  { %2113 = vmatpush.bf16.msra.mxu1 %v3068_v45  ;;  %v4236_v45 = vld [vmem:[%s6436_s1 + $0x4d4] sm:$0xf0] }
  0xce   :  { %2126 = vmatpush.bf16.msra.mxu2 %v3260_v46  ;;  %v2780_v46 = vor.u32 %v4092_v36, %v2779_v34  ;;  %v3356_v54 = vor.u32 %v4236_v45, %v3355_v44  ;;  %v4113_v34 = vld [vmem:[%s6436_s1 + $0x104] sm:$0xf]  ;;  %v2877_v36 = vld [vmem:[%s6436_s1 + $0x118] sm:$0xf0]  ;;  %v3619_v44 = vld [vmem:[%s6436_s1 + $0x6d0] sm:$0xf] }
  0xcf   :  { %2139 = vmatpush.bf16.msra.mxu3 %v3452_v50  ;;  %v3164_v50 = vor.u32 %v4188_v43, %v3163_v42  ;;  %v2880_v43 = vor.u32 %v4113_v34, %v2877_v36  ;;  %v4302_v45 = vld [vmem:[%s6436_s1 + $0x6e4] sm:$0xf0]  ;;  %v4332_v36 = vld [vmem:[%s6436_s1 + $0x7d4] sm:$0xf0] }
  0xd0   :  { %2101 = vmatpush.bf16.msra.mxu0 %v2852_v57  ;;  %v4230_v57 = vld [vmem:[%s6436_s1 + $0x4a4] sm:$0xf0]  ;;  %v1875_v58 = vpop.f32.mrf.mxu2  ;;  %v3620_v53 = vor.u32 %v4302_v45, %v3619_v44  ;;  %v3523_v44 = vld [vmem:[%s6436_s1 + $0x610] sm:$0xf] }
  0xd1   :  { %2114 = vmatpush.bf16.msra.mxu1 %v3044_v60  ;;  %v4320_v60 = vld [vmem:[%s6436_s1 + $0x774] sm:$0xf0]  ;;  %v1888_v62 = vpop.f32.mrf.mxu3  ;;  %v3332_v9 = vor.u32 %v4230_v57, %v3331_v56  ;;  %v3595_v57 = vld [vmem:[%s6436_s1 + $0x6a0] sm:$0xf]  ;;  %v4278_v45 = vld [vmem:[%s6436_s1 + $0x624] sm:$0xf0] }
  0xd2   :  { %2127 = vmatpush.bf16.msra.mxu2 %v3236_v61  ;;  %v3883_v61 = vld [vmem:[%s6436_s1 + $0x8e0] sm:$0xf]  ;;  %v4296_v58 = vld [vmem:[%s6436_s1 + $0x6b4] sm:$0xf0]  ;;  %v3048_v62 = vor.u32 %v4155_v51, %v3045_v52 }
  0xd3   :  { %2140 = vmatpush.bf16.msra.mxu3 %v3428_v1  ;;  %v4125_v1 = vld [vmem:[%s6436_s1 + $0x164] sm:$0xf] }
  0xd4   :  { %2102 = vmatpush.bf16.msra.mxu0 %v2828_v10  ;;  %v3692_v10 = vor.u32 %v4320_v60, %v3691_v59  ;;  %v3787_v59 = vld [vmem:[%s6436_s1 + $0x820] sm:$0xf] }
  0xd5   :  { %2115 = vmatpush.bf16.msra.mxu1 %v3020_v11  ;;  %v3884_v11 = vor.u32 %v4368_v0, %v3883_v61  ;;  %v4101_v0 = vld [vmem:[%s6436_s1 + $0xa4] sm:$0xf] }
  0xd6   :  { %2128 = vmatpush.bf16.msra.mxu2 %v3212_v12  ;;  %v2928_v12 = vor.u32 %v4125_v1, %v2925_v2  ;;  %v2829_v1 = vld [vmem:[%s6436_s1 + $0xb8] sm:$0xf0]  ;;  %v4149_v2 = vld [vmem:[%s6436_s1 + $0x224] sm:$0xf] }
  0xd7   :  { %2141 = vmatpush.bf16.msra.mxu3 %v3404_v16  ;;  %v3120_v16 = vor.u32 %v4173_v6, %v3117_v8  ;;  %v2832_v8 = vor.u32 %v4101_v0, %v2829_v1 }
  0xd8   :  { %2103 = vmatpush.bf16.msra.mxu0 %v2804_v30  ;;  %v4308_v30 = vld [vmem:[%s6436_s1 + $0x714] sm:$0xf0] }
  0xd9   :  { %2116 = vmatpush.bf16.msra.mxu1 %v2996_v32  ;;  %v3096_v32 = vor.u32 %v4167_v24, %v3093_v25  ;;  %v3644_v41 = vor.u32 %v4308_v30, %v3643_v29  ;;  %v2997_v24 = vld [vmem:[%s6436_s1 + $0x208] sm:$0xf0]  ;;  %v3547_v30 = vld [vmem:[%s6436_s1 + $0x640] sm:$0xf] }
  0xda   :  { %2129 = vmatpush.bf16.msra.mxu2 %v3188_v33  ;;  %v4356_v33 = vld [vmem:[%s6436_s1 + $0x894] sm:$0xf0]  ;;  %v3000_v34 = vor.u32 %v4143_v23, %v2997_v24 }
  0xdb   :  { %2142 = vmatpush.bf16.msra.mxu3 %v3380_v40  ;;  %v3069_v40 = vld [vmem:[%s6436_s1 + $0x298] sm:$0xf0]  ;;  %v3836_v42 = vor.u32 %v4356_v33, %v3835_v31  ;;  %v4284_v31 = vld [vmem:[%s6436_s1 + $0x654] sm:$0xf0] }
  0xdc   :  { %2104 = vmatpush.bf16.msra.mxu0 %v2780_v46  ;;  %v3811_v46 = vld [vmem:[%s6436_s1 + $0x850] sm:$0xf]  ;;  %v3072_v47 = vor.u32 %v4161_v37, %v3069_v40  ;;  %v4089_v37 = vld [vmem:[%s6436_s1 + $0x44] sm:$0xf]  ;;  %v2781_v40 = vld [vmem:[%s6436_s1 + $0x58] sm:$0xf0] }
  0xdd   :  { %2117 = vmatpush.bf16.msra.mxu1 %v2972_v49  ;;  %v4107_v49 = vld [vmem:[%s6436_s1 + $0xd4] sm:$0xf]  ;;  %v3812_v55 = vor.u32 %v4350_v48, %v3811_v46  ;;  %v3715_v48 = vld [vmem:[%s6436_s1 + $0x790] sm:$0xf] }
  0xde   :  { %2130 = vmatpush.bf16.msra.mxu2 %v3164_v50  ;;  %v2853_v50 = vld [vmem:[%s6436_s1 + $0xe8] sm:$0xf0] }
  0xdf   :  { %2143 = vmatpush.bf16.msra.mxu3 %v3356_v54  ;;  %v2856_v56 = vor.u32 %v4107_v49, %v2853_v50  ;;  %v4326_v49 = vld [vmem:[%s6436_s1 + $0x7a4] sm:$0xf0]  ;;  %v4083_v50 = vld [vmem:[%s6436_s1 + $0x14] sm:$0xf] }
  0xe0   :  { %2105 = vmatpush.bf16.msra.mxu0 %v2756_v63  ;;  %v1899_v54 = vpop.f32.mrf.mxu0  ;;  %v4344_v63 = vld [vmem:[%s6436_s1 + $0x834] sm:$0xf0]  ;;  %v3716_v0 = vor.u32 %v4326_v49, %v3715_v48 }
  0xe1   :  { %2118 = vmatpush.bf16.msra.mxu1 %v2948_v3  ;;  %v1900_v60 = vadd.f32 %v1899_v54, %v5823_v39  ;;  %v1912_v61 = vpop.f32.mrf.mxu1  ;;  %v3021_v39 = vld [vmem:[%s6436_s1 + $0x238] sm:$0xf0]  ;;  %v3788_v6 = vor.u32 %v4344_v63, %v3787_v59  ;;  %v4131_v54 = vld [vmem:[%s6436_s1 + $0x194] sm:$0xf]  ;;  %v4269_v59 = vld [vmem:[%s6436_s1 + $0x5e4] sm:$0xf] }
  0xe2   :  { %2131 = vmatpush.bf16.msra.mxu2 %v3140_v4  ;;  %v3596_v4 = vor.u32 %v4296_v58, %v3595_v57  ;;  %v3024_v13 = vor.u32 %v4149_v2, %v3021_v39  ;;  %v4221_v57 = vld [vmem:[%s6436_s1 + $0x464] sm:$0xf]  ;;  %v3309_v58 = vld [vmem:[%s6436_s1 + $0x478] sm:$0xf0] }
  0xe3   :  { %2144 = vmatpush.bf16.msra.mxu3 %v3332_v9  ;;  %2106 = vmatmul.bf16.vlgmr.msra.gmra.mxu0 %v4757_v19  ;;  %v1913_v3 = vadd.f32 %v1912_v61, %v1900_v60  ;;  %v3571_v9 = vld [vmem:[%s6436_s1 + $0x670] sm:$0xf]  ;;  %v3524_v60 = vor.u32 %v4278_v45, %v3523_v44  ;;  %v3501_v61 = vld [vmem:[%s6436_s1 + $0x5f8] sm:$0xf0]  ;;  %v4365_v2 = vld [vmem:[%s6436_s1 + $0x8e4] sm:$0xf] }
  0xe4   :  { %2150 = vmatpush.bf16.msrb.mxu0 %v3692_v10  ;;  %2119 = vmatmul.bf16.vlgmr.msra.gmra.mxu1 %v4761_v22  ;;  %v4290_v10 = vld [vmem:[%s6436_s1 + $0x684] sm:$0xf0]  ;;  %v3693_v63 = vld [vmem:[%s6436_s1 + $0x778] sm:$0xf0]  ;;  %v4299_v44 = vld [vmem:[%s6436_s1 + $0x6d4] sm:$0xf] }
  0xe5   :  { %2163 = vmatpush.bf16.msrb.mxu1 %v3884_v11  ;;  %2132 = vmatmul.bf16.vlgmr.msra.gmra.mxu2 %v4755_v18  ;;  %v3763_v11 = vld [vmem:[%s6436_s1 + $0x7f0] sm:$0xf]  ;;  %v3572_v25 = vor.u32 %v4290_v10, %v3571_v9  ;;  %v3885_v39 = vld [vmem:[%s6436_s1 + $0x8f8] sm:$0xf0]  ;;  %v4215_v9 = vld [vmem:[%s6436_s1 + $0x434] sm:$0xf] }
  0xe6   :  { %2176 = vmatpush.bf16.msrb.mxu2 %v2928_v12  ;;  %2145 = vmatmul.bf16.vlgmr.msra.gmra.mxu3 %v4759_v20  ;;  %v3285_v10 = vld [vmem:[%s6436_s1 + $0x448] sm:$0xf0] }
  0xe7   :  { %2189 = vmatpush.bf16.msrb.mxu3 %v3120_v16  ;;  %v2805_v16 = vld [vmem:[%s6436_s1 + $0x88] sm:$0xf0] }
  0xe8   :  { %2151 = vmatpush.bf16.msrb.mxu0 %v3668_v26  ;;  %v1925_v12 = vpop.f32.mrf.mxu2  ;;  %v2808_v29 = vor.u32 %v4095_v15, %v2805_v16  ;;  %v3669_v15 = vld [vmem:[%s6436_s1 + $0x748] sm:$0xf0]  ;;  %v4359_v16 = vld [vmem:[%s6436_s1 + $0x8b4] sm:$0xf] }
  0xe9   :  { %2164 = vmatpush.bf16.msrb.mxu1 %v3860_v27  ;;  %v1926_v17 = vadd.f32 %v1925_v12, %v1913_v3  ;;  %v1938_v21 = vpop.f32.mrf.mxu3  ;;  %v1901_v27 = vpop.f32.mrf.mxu0  ;;  %v3888_v12 = vor.u32 %v4365_v2, %v3885_v39  ;;  %v3621_v45 = vld [vmem:[%s6436_s1 + $0x6e8] sm:$0xf0]  ;;  %v4239_v39 = vld [vmem:[%s6436_s1 + $0x4f4] sm:$0xf] }
  0xea   :  { %2177 = vmatpush.bf16.msrb.mxu2 %v2904_v28  ;;  %v3764_v28 = vor.u32 %v4338_v14, %v3763_v11  ;;  %v1914_v33 = vpop.f32.mrf.mxu1  ;;  %v4263_v11 = vld [vmem:[%s6436_s1 + $0x5b4] sm:$0xf]  ;;  %v3261_v27 = vld [vmem:[%s6436_s1 + $0x418] sm:$0xf0]  ;;  %v3189_v2 = vld [vmem:[%s6436_s1 + $0x388] sm:$0xf0] }
  0xeb   :  { %2190 = vmatpush.bf16.msrb.mxu3 %v3096_v32  ;;  %v6013_v26 = vadd.f32 %v1938_v21, %v1926_v17  ;;  %v3739_v32 = vld [vmem:[%s6436_s1 + $0x7c0] sm:$0xf]  ;;  %v4311_v14 = vld [vmem:[%s6436_s1 + $0x734] sm:$0xf]  ;;  %v3861_v17 = vld [vmem:[%s6436_s1 + $0x8c8] sm:$0xf0]  ;;  %v3288_v21 = vor.u32 %v4215_v9, %v3285_v10 }
  0xec   :  { %2152 = vmatpush.bf16.msrb.mxu0 %v3644_v41  ;;  %v4137_v41 = vld [vmem:[%s6436_s1 + $0x1c4] sm:$0xf]  ;;  %v3740_v46 = vor.u32 %v4332_v36, %v3739_v32  ;;  %v3672_v24 = vor.u32 %v4311_v14, %v3669_v15  ;;  %v3645_v32 = vld [vmem:[%s6436_s1 + $0x718] sm:$0xf0]  ;;  %v4335_v10 = vld [vmem:[%s6436_s1 + $0x7f4] sm:$0xf] }
  0xed   :  { %2165 = vmatpush.bf16.msrb.mxu1 %v3836_v42  ;;  %v2973_v42 = vld [vmem:[%s6436_s1 + $0x1d8] sm:$0xf0]  ;;  %v4353_v33 = vld [vmem:[%s6436_s1 + $0x884] sm:$0xf] }
  0xee   :  { %2178 = vmatpush.bf16.msrb.mxu2 %v2880_v43  ;;  %v3548_v43 = vor.u32 %v4284_v31, %v3547_v30  ;;  %v2976_v52 = vor.u32 %v4137_v41, %v2973_v42  ;;  %v3453_v30 = vld [vmem:[%s6436_s1 + $0x598] sm:$0xf0]  ;;  %v4305_v31 = vld [vmem:[%s6436_s1 + $0x704] sm:$0xf]  ;;  %v3237_v41 = vld [vmem:[%s6436_s1 + $0x3e8] sm:$0xf0] }
  0xef   :  { %2191 = vmatpush.bf16.msrb.mxu3 %v3072_v47  ;;  %v2784_v47 = vor.u32 %v4089_v37, %v2781_v40  ;;  %v3648_v40 = vor.u32 %v4305_v31, %v3645_v32  ;;  %v4251_v42 = vld [vmem:[%s6436_s1 + $0x554] sm:$0xf]  ;;  %v3741_v31 = vld [vmem:[%s6436_s1 + $0x7d8] sm:$0xf0] }
  0xf0   :  { %2153 = vmatpush.bf16.msrb.mxu0 %v3620_v53  ;;  %v1927_v51 = vpop.f32.mrf.mxu2  ;;  %v2757_v53 = vld [vmem:[%s6436_s1 + $0x28] sm:$0xf0] }
  0xf1   :  { %2166 = vmatpush.bf16.msrb.mxu1 %v3812_v55  ;;  %v2949_v55 = vld [vmem:[%s6436_s1 + $0x1a8] sm:$0xf0]  ;;  %v2760_v1 = vor.u32 %v4083_v50, %v2757_v53  ;;  %v4197_v53 = vld [vmem:[%s6436_s1 + $0x3a4] sm:$0xf] }
  0xf2   :  { %2179 = vmatpush.bf16.msrb.mxu2 %v2856_v56  ;;  %v1940_v56 = vpop.f32.mrf.mxu3  ;;  %v2952_v3 = vor.u32 %v4131_v54, %v2949_v55  ;;  %v3213_v54 = vld [vmem:[%s6436_s1 + $0x3b8] sm:$0xf0]  ;;  %v4245_v55 = vld [vmem:[%s6436_s1 + $0x524] sm:$0xf] }
  0xf3   :  { %2192 = vmatpush.bf16.msrb.mxu3 %v3048_v62  ;;  %v4317_v62 = vld [vmem:[%s6436_s1 + $0x764] sm:$0xf] }
  0xf4   :  { %2154 = vmatpush.bf16.msrb.mxu0 %v3596_v4  ;;  %v3312_v4 = vor.u32 %v4221_v57, %v3309_v58  ;;  %v3405_v57 = vld [vmem:[%s6436_s1 + $0x538] sm:$0xf0]  ;;  %v4293_v58 = vld [vmem:[%s6436_s1 + $0x6a4] sm:$0xf] }
  0xf5   :  { %2167 = vmatpush.bf16.msrb.mxu1 %v3788_v6  ;;  %v3504_v6 = vor.u32 %v4269_v59, %v3501_v61  ;;  %v3597_v59 = vld [vmem:[%s6436_s1 + $0x6b8] sm:$0xf0] }
  0xf6   :  { %2180 = vmatpush.bf16.msrb.mxu2 %v2832_v8  ;;  %v3696_v8 = vor.u32 %v4317_v62, %v3693_v63  ;;  %v3789_v61 = vld [vmem:[%s6436_s1 + $0x838] sm:$0xf0]  ;;  %v3216_v62 = vor.u32 %v4197_v53, %v3213_v54  ;;  %v3408_v63 = vor.u32 %v4245_v55, %v3405_v57 }
  0xf7   :  { %2193 = vmatpush.bf16.msrb.mxu3 %v3024_v13  ;;  %v3477_v13 = vld [vmem:[%s6436_s1 + $0x5c8] sm:$0xf0]  ;;  %v4376_v54 = vld [vmem:[%s6439_s3 + $0x38] sm:$0xff] }
  0xf8   :  { %2155 = vmatpush.bf16.msrb.mxu0 %v3572_v25  ;;  %v3480_v23 = vor.u32 %v4263_v11, %v3477_v13  ;;  %v4209_v25 = vld [vmem:[%s6436_s1 + $0x404] sm:$0xf]  ;;  %v3765_v11 = vld [vmem:[%s6436_s1 + $0x808] sm:$0xf0]  ;;  %v4384_v55 = vld [vmem:[%s6439_s3 + $0x78] sm:$0xff] }
  0xf9   :  { %2168 = vmatpush.bf16.msrb.mxu1 %v3764_v28  ;;  %v4257_v28 = vld [vmem:[%s6436_s1 + $0x584] sm:$0xf]  ;;  %v3264_v36 = vor.u32 %v4209_v25, %v3261_v27  ;;  %v3768_v25 = vor.u32 %v4335_v10, %v3765_v11  ;;  %v3357_v27 = vld [vmem:[%s6436_s1 + $0x4d8] sm:$0xf0] }
  0xfa   :  { %2181 = vmatpush.bf16.msrb.mxu2 %v2808_v29  ;;  %v3864_v29 = vor.u32 %v4359_v16, %v3861_v17  ;;  %v3456_v37 = vor.u32 %v4257_v28, %v3453_v30  ;;  %v4281_v28 = vld [vmem:[%s6436_s1 + $0x644] sm:$0xf] }
  0xfb   :  { %2194 = vmatpush.bf16.msrb.mxu3 %v3000_v34  ;;  %v3837_v34 = vld [vmem:[%s6436_s1 + $0x898] sm:$0xf0]  ;;  %v4329_v30 = vld [vmem:[%s6436_s1 + $0x7c4] sm:$0xf] }
  0xfc   :  { %2156 = vmatpush.bf16.msrb.mxu0 %v3548_v43  ;;  %v3840_v43 = vor.u32 %v4353_v33, %v3837_v34  ;;  %v4179_v33 = vld [vmem:[%s6436_s1 + $0x314] sm:$0xf] }
  0xfd   :  { %2169 = vmatpush.bf16.msrb.mxu1 %v3740_v46  ;;  %v4347_v46 = vld [vmem:[%s6436_s1 + $0x854] sm:$0xf] }
  0xfe   :  { %2182 = vmatpush.bf16.msrb.mxu2 %v2784_v47  ;;  %v3813_v47 = vld [vmem:[%s6436_s1 + $0x868] sm:$0xf0] }
  0xff   :  { %2195 = vmatpush.bf16.msrb.mxu3 %v2976_v52  ;;  %v3624_v52 = vor.u32 %v4299_v44, %v3621_v45  ;;  %v3816_v56 = vor.u32 %v4347_v46, %v3813_v47  ;;  %v4323_v45 = vld [vmem:[%s6436_s1 + $0x794] sm:$0xf] }
 0x100   :  { %2157 = vmatpush.bf16.msrb.mxu0 %v3524_v60  ;;  %v6163_v48 = vpop.f32.mrf.mxu0  ;;  %v4341_v60 = vld [vmem:[%s6436_s1 + $0x824] sm:$0xf] }
 0x101   :  { %2170 = vmatpush.bf16.msrb.mxu1 %v3716_v0  ;;  %v6165_v50 = vpop.f32.mrf.mxu1  ;;  %v3600_v0 = vor.u32 %v4293_v58, %v3597_v59  ;;  %v4400_v58 = vld [vmem:[%s6439_s3 + $0xf8] sm:$0xff]  ;;  %v4383_v59 = vld [vmem:[%s6439_s3 + $0x70] sm:$0xff] }
 0x102   :  { %2183 = vmatpush.bf16.msrb.mxu2 %v2760_v1  ;;  %v4191_v1 = vld [vmem:[%s6436_s1 + $0x374] sm:$0xf] }
 0x103   :  { %2196 = vmatpush.bf16.msrb.mxu3 %v2952_v3  ;;  %2158 = vmatmul.bf16.vlgmr.msrb.gmra.mxu0 %v4908_v35  ;;  %v3792_v3 = vor.u32 %v4341_v60, %v3789_v61  ;;  %v3192_v14 = vor.u32 %v4191_v1, %v3189_v2  ;;  %v4374_v61 = vld [vmem:[%s6439_s3 + $0x28] sm:$0xff]  ;;  %v4381_v2 = vld [vmem:[%s6439_s3 + $0x60] sm:$0xff] }
 0x104   :  { %2202 = vmatpush.bf16.msra.mxu0 %v3312_v4  ;;  %2171 = vmatmul.bf16.vlgmr.msrb.gmra.mxu1 %v4916_v38  ;;  %v3381_v4 = vld [vmem:[%s6436_s1 + $0x508] sm:$0xf0] }
 0x105   :  { %2215 = vmatpush.bf16.msra.mxu1 %v3504_v6  ;;  %2184 = vmatmul.bf16.vlgmr.msrb.gmra.mxu2 %v4757_v19  ;;  %v4203_v19 = vld [vmem:[%s6436_s1 + $0x3d4] sm:$0xf]  ;;  %v3384_v16 = vor.u32 %v4239_v39, %v3381_v4  ;;  %v4398_v1 = vld [vmem:[%s6439_s3 + $0xe8] sm:$0xff]  ;;  %v4389_v39 = vld [vmem:[%s6439_s3 + $0xa0] sm:$0xff] }
 0x106   :  { %2228 = vmatpush.bf16.msra.mxu2 %v3696_v8  ;;  %2197 = vmatmul.bf16.vlgmr.msrb.gmra.mxu3 %v4761_v22  ;;  %v3429_v22 = vld [vmem:[%s6436_s1 + $0x568] sm:$0xf0]  ;;  %v3240_v49 = vor.u32 %v4203_v19, %v3237_v41  ;;  %v4287_v6 = vld [vmem:[%s6436_s1 + $0x674] sm:$0xf]  ;;  %v315_v19 = vperm.slane %v5579_v7, 2  ;;  %v3744_v41 = vor.u32 %v4329_v30, %v3741_v31  ;;  %v4372_v4 = vld [vmem:[%s6439_s3 + $0x18] sm:$0xff] }
 0x107   :  { %2241 = vmatpush.bf16.msra.mxu3 %v3888_v12  ;;  %v3432_v51 = vor.u32 %v4251_v42, %v3429_v22  ;;  %v3573_v8 = vld [vmem:[%s6436_s1 + $0x688] sm:$0xf0]  ;;  %v4377_v31 = vld [vmem:[%s6439_s3 + $0x40] sm:$0xff] }
 0x108   :  { %2203 = vmatpush.bf16.msra.mxu0 %v3288_v21  ;;  %v6209_v9 = vpop.f32.mrf.mxu2  ;;  %v1953_v12 = vpop.f32.mrf.mxu0  ;;  %v3576_v17 = vor.u32 %v4287_v6, %v3573_v8  ;;  %v4185_v21 = vld [vmem:[%s6436_s1 + $0x344] sm:$0xf]  ;;  %v3333_v42 = vld [vmem:[%s6436_s1 + $0x4a8] sm:$0xf0]  ;;  %v4380_v8 = vld [vmem:[%s6439_s3 + $0x58] sm:$0xff] }
 0x109   :  { %2216 = vmatpush.bf16.msra.mxu1 %v3480_v23  ;;  %v6217_v13 = vpop.f32.mrf.mxu3  ;;  %v1966_v15 = vpop.f32.mrf.mxu1  ;;  %v3165_v23 = vld [vmem:[%s6436_s1 + $0x358] sm:$0xf0]  ;;  %v3525_v22 = vld [vmem:[%s6436_s1 + $0x628] sm:$0xf0]  ;;  %v4397_v6 = vld [vmem:[%s6439_s3 + $0xe0] sm:$0xff] }
 0x10a   :  { %2229 = vmatpush.bf16.msra.mxu2 %v3672_v24  ;;  %v4233_v24 = vld [vmem:[%s6436_s1 + $0x4c4] sm:$0xf]  ;;  %v3168_v32 = vor.u32 %v4185_v21, %v3165_v23  ;;  %v3717_v7 = vld [vmem:[%s6436_s1 + $0x7a8] sm:$0xf0]  ;;  %v4387_v21 = vld [vmem:[%s6439_s3 + $0x90] sm:$0xff] }
 0x10b   :  { %2242 = vmatpush.bf16.msra.mxu3 %v3864_v29  ;;  %v3549_v29 = vld [vmem:[%s6436_s1 + $0x658] sm:$0xf0]  ;;  %v3360_v34 = vor.u32 %v4233_v24, %v3357_v27  ;;  %v3720_v53 = vor.u32 %v4323_v45, %v3717_v7  ;;  %v4370_v23 = vld [vmem:[%s6439_s3 + $0x8] sm:$0xff]  ;;  %v4395_v24 = vld [vmem:[%s6439_s3 + $0xd0] sm:$0xff] }
 0x10c   :  { %2204 = vmatpush.bf16.msra.mxu0 %v3264_v36  ;;  %v3552_v36 = vor.u32 %v4281_v28, %v3549_v29  ;;  %v4369_v29 = vld [vmem:[%s6439_s3] sm:$0xff]  ;;  %v4407_v7 = vld [vmem:[%s6439_s3 + $0x130] sm:$0xff] }
 0x10d   :  { %2217 = vmatpush.bf16.msra.mxu1 %v3456_v37  ;;  %v3141_v37 = vld [vmem:[%s6436_s1 + $0x328] sm:$0xf0] }
 0x10e   :  { %2230 = vmatpush.bf16.msra.mxu2 %v3648_v40  ;;  %v4227_v40 = vld [vmem:[%s6436_s1 + $0x494] sm:$0xf]  ;;  %v3144_v47 = vor.u32 %v4179_v33, %v3141_v37  ;;  %v6377_v37 = vld [vmem:[%s6438_s2] sm:$0x3f] }
 0x10f   :  { %2243 = vmatpush.bf16.msra.mxu3 %v3840_v43  ;;  %v4275_v43 = vld [vmem:[%s6436_s1 + $0x614] sm:$0xf] }
 0x110   :  { %2205 = vmatpush.bf16.msra.mxu0 %v3240_v49  ;;  %v1979_v44 = vpop.f32.mrf.mxu2  ;;  %v3336_v49 = vor.u32 %v4227_v40, %v3333_v42  ;;  %v316_v40 = vperm.slane %v6377_v37, 3  ;;  %v4393_v42 = vld [vmem:[%s6439_s3 + $0xc0] sm:$0xff] }
 0x111   :  { %2218 = vmatpush.bf16.msra.mxu1 %v3432_v51  ;;  %v1992_v46 = vpop.f32.mrf.mxu3  ;;  %v3528_v51 = vor.u32 %v4275_v43, %v3525_v22 }
 0x112   :  { %2231 = vmatpush.bf16.msra.mxu2 %v3624_v52  ;;  %v1952_v52 = vadd.f32 %v6163_v48, %v315_v19  ;;  %v4375_v48 = vld [vmem:[%s6439_s3 + $0x30] sm:$0xff] }
 0x113   :  { %2244 = vmatpush.bf16.msra.mxu3 %v3816_v56  ;;  %v4392_v56 = vld [vmem:[%s6439_s3 + $0xb8] sm:$0xff] }
 0x114   :  { %2206 = vmatpush.bf16.msra.mxu0 %v3216_v62  ;;  %v1965_v57 = vadd.f32 %v6165_v50, %v1952_v52  ;;  %v4391_v50 = vld [vmem:[%s6439_s3 + $0xb0] sm:$0xff] }
 0x115   :  { %2219 = vmatpush.bf16.msra.mxu1 %v3408_v63  ;;  %v4399_v62 = vld [vmem:[%s6439_s3 + $0xf0] sm:$0xff]  ;;  %v4373_v63 = vld [vmem:[%s6439_s3 + $0x20] sm:$0xff] }
 0x116   :  { %2232 = vmatpush.bf16.msra.mxu2 %v3600_v0  ;;  %v1978_v60 = vadd.f32 %v6209_v9, %v1965_v57  ;;  %v4388_v9 = vld [vmem:[%s6439_s3 + $0x98] sm:$0xff] }
 0x117   :  { %2245 = vmatpush.bf16.msra.mxu3 %v3792_v3 }
 0x118   :  { %2207 = vmatpush.bf16.msra.mxu0 %v3192_v14  ;;  %v4371_v14 = vld [vmem:[%s6439_s3 + $0x10] sm:$0xff] }
 0x119   :  { %2220 = vmatpush.bf16.msra.mxu1 %v3384_v16  ;;  %v4396_v16 = vld [vmem:[%s6439_s3 + $0xd8] sm:$0xff] }
 0x11a   :  { %2233 = vmatpush.bf16.msra.mxu2 %v3576_v17  ;;  %v4379_v17 = vld [vmem:[%s6439_s3 + $0x50] sm:$0xff] }
 0x11b   :  { %2246 = vmatpush.bf16.msra.mxu3 %v3768_v25  ;;  %v4378_v25 = vld [vmem:[%s6439_s3 + $0x48] sm:$0xff] }
 0x11c   :  { %2208 = vmatpush.bf16.msra.mxu0 %v3168_v32  ;;  %v4385_v32 = vld [vmem:[%s6439_s3 + $0x80] sm:$0xff] }
 0x11d   :  { %2221 = vmatpush.bf16.msra.mxu1 %v3360_v34  ;;  %v4408_v34 = vld [vmem:[%s6439_s3 + $0x138] sm:$0xff] }
 0x11e   :  { %2234 = vmatpush.bf16.msra.mxu2 %v3552_v36 }
 0x11f   :  { %2247 = vmatpush.bf16.msra.mxu3 %v3744_v41 }
 0x120   :  { %2209 = vmatpush.bf16.msra.mxu0 %v3144_v47 }
 0x121   :  { %2222 = vmatpush.bf16.msra.mxu1 %v3336_v49  ;;  %v2016_v0 = vpop.f32.mrf.mxu1  ;;  %v4406_v49 = vld [vmem:[%s6439_s3 + $0x128] sm:$0xff] }
 0x122   :  { %2235 = vmatpush.bf16.msra.mxu2 %v3528_v51 }
 0x123   :  { %2248 = vmatpush.bf16.msra.mxu3 %v3720_v53  ;;  %2210 = vmatmul.bf16.vlgmr.msra.gmra.mxu0 %v4755_v18  ;;  %v4382_v18 = vld [vmem:[%s6439_s3 + $0x68] sm:$0xff] }
 0x124   :  { %2654 = vmatpush.bf16.msrb.mxu0 %v4376_v54  ;;  %2223 = vmatmul.bf16.vlgmr.msra.gmra.mxu1 %v4759_v20  ;;  %v4390_v20 = vld [vmem:[%s6439_s3 + $0xa8] sm:$0xff] }
 0x125   :  { %2667 = vmatpush.bf16.msrb.mxu1 %v4384_v55  ;;  %2236 = vmatmul.bf16.vlgmr.msra.gmra.mxu2 %v4908_v35  ;;  %v1991_v35 = vadd.f32 %v6217_v13, %v1978_v60  ;;  %v4405_v55 = vld [vmem:[%s6439_s3 + $0x120] sm:$0xff] }
 0x126   :  { %2680 = vmatpush.bf16.msrb.mxu2 %v4392_v56  ;;  %2249 = vmatmul.bf16.vlgmr.msra.gmra.mxu3 %v4916_v38  ;;  %v2003_v38 = vpop.f32.mrf.mxu0 }
 0x127   :  { %2693 = vmatpush.bf16.msrb.mxu3 %v4400_v58  ;;  %v2004_v3 = vadd.f32 %v2003_v38, %v1991_v35  ;;  %v4404_v58 = vld [vmem:[%s6439_s3 + $0x118] sm:$0xff]  ;;  %v4402_v35 = vld [vmem:[%s6439_s3 + $0x108] sm:$0xff] }
 0x128   :  { %2655 = vmatpush.bf16.msrb.mxu0 %v4375_v48  ;;  %v2029_v10 = vpop.f32.mrf.mxu2 }
 0x129   :  { %2668 = vmatpush.bf16.msrb.mxu1 %v4383_v59  ;;  %v2017_v11 = vadd.f32 %v2016_v0, %v2004_v3  ;;  %v2042_v12 = vpop.f32.mrf.mxu3  ;;  %v2018_v15 = vpop.f32.mrf.mxu1  ;;  %v2030_v22 = vadd.f32 %v2029_v10, %v316_v40  ;;  %v4416_v3 = vld [vmem:[%s6439_s3 + $0x178] sm:$0xff]  ;;  %v4414_v10 = vld [vmem:[%s6439_s3 + $0x168] sm:$0xff] }
 0x12a   :  { %2681 = vmatpush.bf16.msrb.mxu2 %v4391_v50 }
 0x12b   :  { %2694 = vmatpush.bf16.msrb.mxu3 %v4399_v62  ;;  %4418 = vtanh.f32 %v2017_v11  ;;  %v2043_v44 = vadd.f32 %v2042_v12, %v2030_v22 }
 0x12c   :  { %2656 = vmatpush.bf16.msrb.mxu0 %v4374_v61  ;;  %4420 = vtanh.f32 %v5781_v5  ;;  %v4386_v5 = vld [vmem:[%s6439_s3 + $0x88] sm:$0xff] }
 0x12d   :  { %2669 = vmatpush.bf16.msrb.mxu1 %v4382_v18  ;;  %4422 = vtanh.f32 %v6013_v26  ;;  %v4394_v26 = vld [vmem:[%s6439_s3 + $0xc8] sm:$0xff] }
 0x12e   :  { %2682 = vmatpush.bf16.msrb.mxu2 %v4390_v20  ;;  %v2005_v13 = vpop.f32.mrf.mxu0  ;;  %v4403_v20 = vld [vmem:[%s6439_s3 + $0x110] sm:$0xff] }
 0x12f   :  { %2695 = vmatpush.bf16.msrb.mxu3 %v4398_v1 }
 0x130   :  { %2657 = vmatpush.bf16.msrb.mxu0 %v4373_v63  ;;  %v2031_v27 = vpop.f32.mrf.mxu2 }
 0x131   :  { %2670 = vmatpush.bf16.msrb.mxu1 %v4381_v2  ;;  %v2044_v28 = vpop.f32.mrf.mxu3  ;;  %v4419_v30 = vpop.eup %4418  ;;  %v4401_v2 = vld [vmem:[%s6439_s3 + $0x100] sm:$0xff] }
 0x132   :  { %2683 = vmatpush.bf16.msrb.mxu2 %v4389_v39  ;;  %v4421_v33 = vpop.eup %4420  ;;  %v2262_v19 = vpack.c.bf16 %v4419_v30, %v4419_v30  ;;  %v317_v39 = vperm.slane %v6377_v37, 4 }
 0x133   :  { %2696 = vmatpush.bf16.msrb.mxu3 %v4397_v6  ;;  %v4423_v36 = vpop.eup %4422  ;;  %v2260_v41 = vpack.c.bf16 %v4421_v33, %v4421_v33 }
 0x134   :  { %2658 = vmatpush.bf16.msrb.mxu0 %v4372_v4  ;;  %v2261_v43 = vpack.c.bf16 %v4423_v36, %v4423_v36  ;;  %v4415_v4 = vld [vmem:[%s6439_s3 + $0x170] sm:$0xff] }
 0x135   :  { %2671 = vmatpush.bf16.msrb.mxu1 %v4380_v8 }
 0x136   :  { %2684 = vmatpush.bf16.msrb.mxu2 %v4388_v9 }
 0x137   :  { %2697 = vmatpush.bf16.msrb.mxu3 %v4396_v16 }
 0x138   :  { %2659 = vmatpush.bf16.msrb.mxu0 %v4371_v14  ;;  %v4413_v14 = vld [vmem:[%s6439_s3 + $0x160] sm:$0xff] }
 0x139   :  { %2672 = vmatpush.bf16.msrb.mxu1 %v4379_v17 }
 0x13a   :  { %2685 = vmatpush.bf16.msrb.mxu2 %v4387_v21  ;;  %v4412_v21 = vld [vmem:[%s6439_s3 + $0x158] sm:$0xff] }
 0x13b   :  { %2698 = vmatpush.bf16.msrb.mxu3 %v4395_v24  ;;  %v4411_v24 = vld [vmem:[%s6439_s3 + $0x150] sm:$0xff] }
 0x13c   :  { %2660 = vmatpush.bf16.msrb.mxu0 %v4370_v23 }
 0x13d   :  { %2673 = vmatpush.bf16.msrb.mxu1 %v4378_v25 }
 0x13e   :  { %2686 = vmatpush.bf16.msrb.mxu2 %v4386_v5 }
 0x13f   :  { %2699 = vmatpush.bf16.msrb.mxu3 %v4394_v26 }
 0x140   :  { %2661 = vmatpush.bf16.msrb.mxu0 %v4369_v29  ;;  %v2055_v45 = vpop.f32.mrf.mxu0  ;;  %v4410_v29 = vld [vmem:[%s6439_s3 + $0x148] sm:$0xff] }
 0x141   :  { %2674 = vmatpush.bf16.msrb.mxu1 %v4377_v31  ;;  %v2056_v46 = vadd.f32 %v2055_v45, %v2043_v44  ;;  %v2068_v47 = vpop.f32.mrf.mxu1  ;;  %v4409_v31 = vld [vmem:[%s6439_s3 + $0x140] sm:$0xff] }
 0x142   :  { %2687 = vmatpush.bf16.msrb.mxu2 %v4385_v32 }
 0x143   :  { %2662 = vmatmul.bf16.vlgmr.msrb.gmra.mxu0 %v2260_v41  ;;  %2700 = vmatpush.bf16.msrb.mxu3 %v4393_v42  ;;  %v2069_v51 = vadd.f32 %v2068_v47, %v2056_v46 }
 0x144   :  { %2706 = vmatpush.bf16.msra.mxu0 %v4408_v34  ;;  %2675 = vmatmul.bf16.vlgmr.msrb.gmra.mxu1 %v2261_v43  ;;  %v318_v34 = vperm.slane %v6377_v37, 5  ;;  %v4417_v37 = vld [vmem:[%s6440_s4] ss:$0 sm:$0xff] }
 0x145   :  { %2688 = vmatmul.bf16.vlgmr.msrb.gmra.mxu2 %v2262_v19  ;;  %2719 = vmatpush.bf16.msra.mxu1 %v4416_v3 }
 0x148   :  { %2707 = vmatpush.bf16.msra.mxu0 %v4407_v7  ;;  %v2081_v52 = vpop.f32.mrf.mxu2  ;;  %v2057_v57 = vpop.f32.mrf.mxu0 }
 0x149   :  { %v2082_v53 = vadd.f32 %v2081_v52, %v2069_v51  ;;  %v2094_v54 = vpop.f32.mrf.mxu3  ;;  %v2070_v48 = vpop.f32.mrf.mxu1  ;;  %2720 = vmatpush.bf16.msra.mxu1 %v4415_v4 }
 0x14b   :  { %v2095_v56 = vadd.f32 %v2094_v54, %v2082_v53 }
 0x14c   :  { %2708 = vmatpush.bf16.msra.mxu0 %v4406_v49 }
 0x14d   :  { %4424 = vtanh.f32 %v2095_v56  ;;  %2721 = vmatpush.bf16.msra.mxu1 %v4414_v10 }
 0x150   :  { %2709 = vmatpush.bf16.msra.mxu0 %v4405_v55  ;;  %v2083_v59 = vpop.f32.mrf.mxu2 }
 0x151   :  { %v2096_v50 = vpop.f32.mrf.mxu3  ;;  %2722 = vmatpush.bf16.msra.mxu1 %v4413_v14 }
 0x153   :  { %v4425_v60 = vpop.eup %4424 }
 0x154   :  { %2710 = vmatpush.bf16.msra.mxu0 %v4404_v58  ;;  %v2263_v61 = vpack.c.bf16 %v4425_v60, %v4425_v60 }
 0x155   :  { %2723 = vmatpush.bf16.msra.mxu1 %v4412_v21 }
 0x156   :  { %2701 = vmatmul.bf16.vlgmr.msrb.gmra.mxu3 %v2263_v61 }
 0x158   :  { %2711 = vmatpush.bf16.msra.mxu0 %v4403_v20 }
 0x159   :  { %2724 = vmatpush.bf16.msra.mxu1 %v4411_v24 }
 0x15c   :  { %2712 = vmatpush.bf16.msra.mxu0 %v4402_v35 }
 0x15d   :  { %2725 = vmatpush.bf16.msra.mxu1 %v4410_v29 }
 0x160   :  { %v2107_v62 = vpop.f32.mrf.mxu0  ;;  %2713 = vmatpush.bf16.msra.mxu0 %v4401_v2 }
 0x161   :  { %v2120_v18 = vpop.f32.mrf.mxu1  ;;  %v2108_v6 = vadd.f32 %v2107_v62, %v317_v39  ;;  %2726 = vmatpush.bf16.msra.mxu1 %v4409_v31 }
 0x163   :  { %v2121_v11 = vadd.f32 %v2120_v18, %v2108_v6 }
 0x168   :  { %v2133_v38 = vpop.f32.mrf.mxu2  ;;  %v2109_v63 = vpop.f32.mrf.mxu0 }
 0x169   :  { %v2146_v0 = vpop.f32.mrf.mxu3  ;;  %v2122_v1 = vpop.f32.mrf.mxu1  ;;  %v2134_v12 = vadd.f32 %v2133_v38, %v2121_v11 }
 0x16b   :  { %v2147_v13 = vadd.f32 %v2146_v0, %v2134_v12 }
 0x170   :  { %v2135_v8 = vpop.f32.mrf.mxu2 }
 0x171   :  { %v2148_v9 = vpop.f32.mrf.mxu3 }
 0x180   :  { %v2159_v15 = vpop.f32.mrf.mxu0 }
 0x181   :  { %v2160_v16 = vadd.f32 %v2159_v15, %v2147_v13  ;;  %v2172_v17 = vpop.f32.mrf.mxu1 }
 0x183   :  { %v2173_v23 = vadd.f32 %v2172_v17, %v2160_v16 }
 0x185   :  { %4426 = vtanh.f32 %v2173_v23 }
 0x188   :  { %v2185_v25 = vpop.f32.mrf.mxu2  ;;  %v2161_v27 = vpop.f32.mrf.mxu0 }
 0x189   :  { %v2198_v5 = vpop.f32.mrf.mxu3  ;;  %v2174_v28 = vpop.f32.mrf.mxu1  ;;  %v2186_v36 = vadd.f32 %v2185_v25, %v318_v34 }
 0x18b   :  { %v4427_v26 = vpop.eup %4426  ;;  %v2199_v40 = vadd.f32 %v2198_v5, %v2186_v36 }
 0x18c   :  { %v2264_v30 = vpack.c.bf16 %v4427_v26, %v4427_v26 }
 0x18e   :  { %2714 = vmatmul.bf16.vlgmr.msra.gmra.mxu0 %v2264_v30 }
 0x190   :  { %v2187_v32 = vpop.f32.mrf.mxu2 }
 0x191   :  { %v2200_v33 = vpop.f32.mrf.mxu3 }
 0x1a0   :  { %v2211_v19 = vpop.f32.mrf.mxu0 }
 0x1a1   :  { %v2224_v41 = vpop.f32.mrf.mxu1  ;;  %v2212_v42 = vadd.f32 %v2211_v19, %v2199_v40 }
 0x1a3   :  { %v2225_v43 = vadd.f32 %v2224_v41, %v2212_v42 }
 0x1a8   :  { %v2237_v22 = vpop.f32.mrf.mxu2  ;;  %v2213_v7 = vpop.f32.mrf.mxu0 }
 0x1a9   :  { %v2250_v44 = vpop.f32.mrf.mxu3  ;;  %v2238_v45 = vadd.f32 %v2237_v22, %v2225_v43  ;;  %v2226_v46 = vpop.f32.mrf.mxu1 }
 0x1ab   :  { %v2251_v47 = vadd.f32 %v2250_v44, %v2238_v45 }
 0x1ad   :  { %4428 = vtanh.f32 %v2251_v47 }
 0x1b0   :  { %v2239_v49 = vpop.f32.mrf.mxu2 }
 0x1b1   :  { %v2252_v51 = vpop.f32.mrf.mxu3 }
 0x1b3   :  { %v4429_v52 = vpop.eup %4428 }
 0x1b4   :  { %v2265_v53 = vpack.c.bf16 %v4429_v52, %v4429_v52 }
 0x1b6   :  { %2727 = vmatmul.bf16.vlgmr.msra.gmra.mxu1 %v2265_v53 }
 0x1c0   :  { %v2663_v54 = vpop.f32.mrf.mxu0 }
 0x1c1   :  { %v2664_v55 = vadd.f32 %v4417_v37, %v2663_v54  ;;  %v2676_v56 = vpop.f32.mrf.mxu1 }
 0x1c3   :  { %v2677_v57 = vadd.f32 %v2676_v56, %v2664_v55 }
 0x1c8   :  { %v2689_v48 = vpop.f32.mrf.mxu2  ;;  %v2665_v59 = vpop.f32.mrf.mxu0 }
 0x1c9   :  { %v2690_v58 = vadd.f32 %v2689_v48, %v2677_v57  ;;  %v2678_v50 = vpop.f32.mrf.mxu1 }
 0x1d0   :  { %v2691_v60 = vpop.f32.mrf.mxu2 }
 0x1d9   :  { %v2702_v61 = vpop.f32.mrf.mxu3 }
 0x1da   :  { %v2703_v62 = vadd.f32 %v2702_v61, %v2690_v58 }
 0x1e1   :  { %v2704_v18 = vpop.f32.mrf.mxu3 }
 0x20b   :  { %v2715_v20 = vpop.f32.mrf.mxu0 }
 0x20c   :  { %v2716_v38 = vadd.f32 %v2715_v20, %v2703_v62 }
 0x213   :  { %v2717_v35 = vpop.f32.mrf.mxu0 }
 0x233   :  { %v2728_v63 = vpop.f32.mrf.mxu1 }
 0x234   :  { %v2729_v0 = vadd.f32 %v2728_v63, %v2716_v38 }
 0x236   :  { %2732 = vst [vmem:[%s6441_s5] sm:$0xff] %v2729_v0 }
 0x23b   :  { %v2730_v1 = vpop.f32.mrf.mxu1 }

</bundles_post_ra>
